<compile_context>
chip_gen: v7x
topology: tpu7x:2x2x1
jax: 0.10.0
libtpu: 0.0.40
codegen_flags: <defaults>
</compile_context>

<pallas_src>
import math

import jax
import jax.numpy as jnp
from jax.experimental import pallas as pl
from jax.experimental.pallas import tpu as pltpu

# ----------------------------- config (small) -----------------------------
B, S = 2, 8                       # batch, sequence length
N_CLASSES = 4                     # ['Bar', 'Position', 'Pitch', 'Duration']
EMB_SIZE = 256                    # module hard-codes emb_sizes = [256]*4
VOCAB = 16                        # synthetic vocab size per class
HIDDEN = 128                      # bertConfig.hidden_size == d_model
N_HEADS = 4
HEAD_DIM = HIDDEN // N_HEADS
INTERMEDIATE = 256
N_LAYERS = 2
LN_EPS = 1e-12


# ------------------------------- kernel ------------------------------------
def _layernorm(h, g, b):
    mean = jnp.mean(h, axis=-1, keepdims=True)
    var = jnp.mean(jnp.square(h - mean), axis=-1, keepdims=True)
    return (h - mean) * jax.lax.rsqrt(var + LN_EPS) * g + b


def midibert_fused_kernel(
        ids_ref, mask_ref, folded_ref, cvec_ref, pos_ref, poolw_ref,
        wqkv_ref, bqkv_ref, wo_ref, w1_ref, b1_ref, w2_ref, lvec_ref,
        emb_out_ref, layer_out_ref, pool_out_ref,
        x_scr):
    """Grid = (batch b, layer l).  Hidden state lives in x_scr across l."""
    l = pl.program_id(1)
    n_layers = pl.num_programs(1)

    cvecs = cvec_ref[...]          # (4, H): [in_b + tok_type_emb, emb_ln_g, emb_ln_b, pool_b]

    # ---- prologue (l == 0): folded embeddings -> +pos -> LayerNorm --------
    @pl.when(l == 0)
    def _embed():
        ids = ids_ref[...]                                  # (S, 4) int32
        col = jax.lax.broadcasted_iota(jnp.int32, (S, N_CLASSES * VOCAB), 1)
        onehot = jnp.zeros((S, N_CLASSES * VOCAB), jnp.float32)
        for i in range(N_CLASSES):
            onehot += (col == ids[:, i:i + 1] + i * VOCAB).astype(jnp.float32)
        # folded_ref already contains sqrt(EMB_SIZE) * emb_table_i @ in_w_i
        emb = jnp.dot(onehot.astype(jnp.bfloat16), folded_ref[...],
                      preferred_element_type=jnp.float32)   # (S, H)
        h = emb + cvecs[0:1, :] + pos_ref[...]
        h = _layernorm(h, cvecs[1:2, :], cvecs[2:3, :])
        x_scr[...] = h
        emb_out_ref[...] = h

    # ---- one encoder layer (runs every grid step) -------------------------
    x = x_scr[...]                                          # (S, H) f32
    xb = x.astype(jnp.bfloat16)
    xh = jnp.broadcast_to(xb, (N_HEADS, S, HIDDEN))         # (NH, S, H)

    # head-batched Q/K/V projections: (NH,S,H) @ (NH,H,HD) -> (NH,S,HD)
    q = jnp.einsum('hsk,hkd->hsd', xh, wqkv_ref[0],
                   preferred_element_type=jnp.float32) + bqkv_ref[0]
    k = jnp.einsum('hsk,hkd->hsd', xh, wqkv_ref[1],
                   preferred_element_type=jnp.float32) + bqkv_ref[1]
    v = jnp.einsum('hsk,hkd->hsd', xh, wqkv_ref[2],
                   preferred_element_type=jnp.float32) + bqkv_ref[2]

    scores = jnp.einsum('hqd,hkd->hqk', q.astype(jnp.bfloat16),
                        k.astype(jnp.bfloat16),
                        preferred_element_type=jnp.float32)  # (NH, S, S)
    scores = scores * (1.0 / math.sqrt(HEAD_DIM)) + mask_ref[...]
    m = jnp.max(scores, axis=-1, keepdims=True)
    p = jnp.exp(scores - m)
    p = p / jnp.sum(p, axis=-1, keepdims=True)

    ctx = jnp.einsum('hqk,hkd->hqd', p.astype(jnp.bfloat16),
                     v.astype(jnp.bfloat16),
                     preferred_element_type=jnp.float32)     # (NH, S, HD)

    lvecs = lvec_ref[...]          # (6, H): [bo, ln1_g, ln1_b, b2, ln2_g, ln2_b]
    attn = jnp.einsum('hsd,hdk->hsk', ctx.astype(jnp.bfloat16), wo_ref[...],
                      preferred_element_type=jnp.float32)    # (NH, S, H)
    attn = jnp.sum(attn, axis=0) + lvecs[0:1, :]
    h1 = _layernorm(x + attn, lvecs[1:2, :], lvecs[2:3, :])

    ff = jnp.dot(h1.astype(jnp.bfloat16), w1_ref[...],
                 preferred_element_type=jnp.float32) + b1_ref[...]
    # TODO(synk): HF BERT uses exact erf-GELU; tanh approximation used here.
    ff = jax.nn.gelu(ff, approximate=True)
    ff = jnp.dot(ff.astype(jnp.bfloat16), w2_ref[...],
                 preferred_element_type=jnp.float32) + lvecs[3:4, :]
    h2 = _layernorm(h1 + ff, lvecs[4:5, :], lvecs[5:6, :])

    x_scr[...] = h2
    layer_out_ref[...] = h2

    # ---- epilogue (l == last): BERT pooler on the first token -------------
    @pl.when(l == n_layers - 1)
    def _pool():
        first = h2[0:1, :]                                   # (1, H)
        pooled = jnp.tanh(
            jnp.dot(first.astype(jnp.bfloat16), poolw_ref[...],
                    preferred_element_type=jnp.float32) + cvecs[3:4, :])
        pool_out_ref[...] = pooled


# ------------------------------ wrapper -------------------------------------
def midibert_forward(params, input_ids, attn_mask=None):
    bsz, slen, _ = input_ids.shape
    assert slen == S and bsz == B

    if attn_mask is None:
        attn_mask = jnp.ones((bsz, slen), jnp.float32)
    ext_mask = ((1.0 - attn_mask.astype(jnp.float32)) * -10000.0)[:, None, :]

    # ---- fold / repack parameters (plain JAX, outside the kernel) ----------
    sqrt_d = math.sqrt(EMB_SIZE)
    folded = [sqrt_d * params['emb_tables'][i]
              @ params['in_w'][i * EMB_SIZE:(i + 1) * EMB_SIZE, :]
              for i in range(N_CLASSES)]
    folded_tab = jnp.concatenate(folded, axis=0).astype(jnp.bfloat16)   # (4V, H)

    in_b_eff = params['in_b'].reshape(1, HIDDEN) + params['tok_emb'].reshape(1, HIDDEN)
    cvecs = jnp.concatenate([
        in_b_eff,
        params['emb_ln_g'].reshape(1, HIDDEN),
        params['emb_ln_b'].reshape(1, HIDDEN),
        params['pool_b'].reshape(1, HIDDEN)], axis=0)                   # (4, H)
    pos = params['pos_emb'].reshape(S, HIDDEN)
    pool_w = params['pool_w'].astype(jnp.bfloat16)

    def headify_w(w):   # (H, H) -> (NH, H, HD)
        return w.reshape(HIDDEN, N_HEADS, HEAD_DIM).transpose(1, 0, 2)

    def headify_b(b):   # (1, 1, H) -> (NH, 1, HD)
        return b.reshape(N_HEADS, HEAD_DIM)[:, None, :]

    wqkv_l, bqkv_l, wo_l, w1_l, b1_l, w2_l, lv_l = [], [], [], [], [], [], []
    for (wq, bq, wk, bk, wv, bv, wo, bo, g1, be1,
         w1, b1, w2, b2, g2, be2) in params['layers']:
        wqkv_l.append(jnp.stack([headify_w(wq), headify_w(wk), headify_w(wv)]))
        bqkv_l.append(jnp.stack([headify_b(bq), headify_b(bk), headify_b(bv)]))
        wo_l.append(wo.reshape(N_HEADS, HEAD_DIM, HIDDEN))
        w1_l.append(w1)
        b1_l.append(b1.reshape(1, INTERMEDIATE))
        w2_l.append(w2)
        lv_l.append(jnp.stack([bo.reshape(HIDDEN), g1.reshape(HIDDEN),
                               be1.reshape(HIDDEN), b2.reshape(HIDDEN),
                               g2.reshape(HIDDEN), be2.reshape(HIDDEN)]))
    wqkv = jnp.stack(wqkv_l).astype(jnp.bfloat16)    # (L, 3, NH, H, HD)
    bqkv = jnp.stack(bqkv_l)                         # (L, 3, NH, 1, HD) f32
    wo_r = jnp.stack(wo_l).astype(jnp.bfloat16)      # (L, NH, HD, H)
    w1_s = jnp.stack(w1_l).astype(jnp.bfloat16)      # (L, H, I)
    b1_s = jnp.stack(b1_l)                           # (L, 1, I) f32
    w2_s = jnp.stack(w2_l).astype(jnp.bfloat16)      # (L, I, H)
    lvecs = jnp.stack(lv_l)                          # (L, 6, H) f32

    ids = input_ids.astype(jnp.int32)
    L = N_LAYERS

    emb_hidden, layer_hidden, pooled3 = pl.pallas_call(
        midibert_fused_kernel,
        out_shape=(
            jax.ShapeDtypeStruct((bsz, slen, HIDDEN), jnp.float32),      # embedding output
            jax.ShapeDtypeStruct((L, bsz, slen, HIDDEN), jnp.float32),   # per-layer hidden
            jax.ShapeDtypeStruct((bsz, 1, HIDDEN), jnp.float32),         # pooled
        ),
        grid_spec=pltpu.PrefetchScalarGridSpec(
            num_scalar_prefetch=0,
            grid=(bsz, L),
            in_specs=[
                pl.BlockSpec((None, slen, N_CLASSES), lambda b, l: (b, 0, 0)),     # ids
                pl.BlockSpec((None, 1, slen), lambda b, l: (b, 0, 0)),             # ext mask
                pl.BlockSpec((N_CLASSES * VOCAB, HIDDEN), lambda b, l: (0, 0)),    # folded tab
                pl.BlockSpec((4, HIDDEN), lambda b, l: (0, 0)),                    # const vecs
                pl.BlockSpec((slen, HIDDEN), lambda b, l: (0, 0)),                 # pos emb
                pl.BlockSpec((HIDDEN, HIDDEN), lambda b, l: (0, 0)),               # pooler W
                pl.BlockSpec((None, 3, N_HEADS, HIDDEN, HEAD_DIM),
                             lambda b, l: (l, 0, 0, 0, 0)),                        # Wqkv
                pl.BlockSpec((None, 3, N_HEADS, 1, HEAD_DIM),
                             lambda b, l: (l, 0, 0, 0, 0)),                        # bqkv
                pl.BlockSpec((None, N_HEADS, HEAD_DIM, HIDDEN),
                             lambda b, l: (l, 0, 0, 0)),                           # Wo
                pl.BlockSpec((None, HIDDEN, INTERMEDIATE), lambda b, l: (l, 0, 0)),# W1
                pl.BlockSpec((None, 1, INTERMEDIATE), lambda b, l: (l, 0, 0)),     # b1
                pl.BlockSpec((None, INTERMEDIATE, HIDDEN), lambda b, l: (l, 0, 0)),# W2
                pl.BlockSpec((None, 6, HIDDEN), lambda b, l: (l, 0, 0)),           # layer vecs
            ],
            out_specs=[
                pl.BlockSpec((None, slen, HIDDEN), lambda b, l: (b, 0, 0)),
                pl.BlockSpec((None, None, slen, HIDDEN), lambda b, l: (l, b, 0, 0)),
                pl.BlockSpec((None, 1, HIDDEN), lambda b, l: (b, 0, 0)),
            ],
            scratch_shapes=[pltpu.VMEM((S, HIDDEN), jnp.float32)],
        ),
        compiler_params=pltpu.CompilerParams(
            dimension_semantics=("parallel", "arbitrary")),
    )(ids, ext_mask, folded_tab, cvecs, pos, pool_w,
      wqkv, bqkv, wo_r, w1_s, b1_s, w2_s, lvecs)

    hidden_states = (emb_hidden,) + tuple(layer_hidden[i] for i in range(L))
    return {
        'last_hidden_state': layer_hidden[L - 1],
        'pooler_output': pooled3.reshape(bsz, HIDDEN),
        'hidden_states': hidden_states,
    }


# --------------------------- parameter init --------------------------------
def init_params(key):
    keys = iter(jax.random.split(key, 128))

    def nrm(shape):
        return jax.random.normal(next(keys), shape, jnp.float32) * 0.02

    params = {
        'emb_tables': [nrm((VOCAB, EMB_SIZE)) for _ in range(N_CLASSES)],
        'in_w': nrm((N_CLASSES * EMB_SIZE, HIDDEN)),
        'in_b': nrm((1, HIDDEN)),
        'pos_emb': nrm((1, S, HIDDEN)),
        'tok_emb': nrm((1, 1, HIDDEN)),
        'emb_ln_g': jnp.ones((1, 1, HIDDEN), jnp.float32),
        'emb_ln_b': jnp.zeros((1, 1, HIDDEN), jnp.float32),
        'pool_w': nrm((HIDDEN, HIDDEN)),
        'pool_b': nrm((1, HIDDEN)),
    }
    layers = []
    for _ in range(N_LAYERS):
        layers.append((
            nrm((HIDDEN, HIDDEN)), nrm((1, 1, HIDDEN)),              # Wq, bq
            nrm((HIDDEN, HIDDEN)), nrm((1, 1, HIDDEN)),              # Wk, bk
            nrm((HIDDEN, HIDDEN)), nrm((1, 1, HIDDEN)),              # Wv, bv
            nrm((HIDDEN, HIDDEN)), nrm((1, 1, HIDDEN)),              # Wo, bo
            jnp.ones((1, 1, HIDDEN), jnp.float32),                   # LN1 gamma
            jnp.zeros((1, 1, HIDDEN), jnp.float32),                  # LN1 beta
            nrm((HIDDEN, INTERMEDIATE)), nrm((1, 1, INTERMEDIATE)),  # FFN W1, b1
            nrm((INTERMEDIATE, HIDDEN)), nrm((1, 1, HIDDEN)),        # FFN W2, b2
            jnp.ones((1, 1, HIDDEN), jnp.float32),                   # LN2 gamma
            jnp.zeros((1, 1, HIDDEN), jnp.float32),                  # LN2 beta
        ))
    params['layers'] = layers
    return params


# --------------------------------- main -------------------------------------
if __name__ == "__main__":
    key = jax.random.PRNGKey(0)
    pkey, dkey = jax.random.split(key)
    params = init_params(pkey)

    input_ids = jax.random.randint(dkey, (B, S, N_CLASSES), 0, VOCAB,
                                   dtype=jnp.int32)
    attn_mask = jnp.ones((B, S), jnp.float32)

    forward = jax.jit(midibert_forward)
    out = forward(params, input_ids, attn_mask)
    jax.block_until_ready(out)

    assert out['last_hidden_state'].shape == (B, S, HIDDEN)
    assert out['pooler_output'].shape == (B, HIDDEN)
    assert len(out['hidden_states']) == N_LAYERS + 1
    print("KERNEL_OK")
</pallas_src>

<mosaic_0001>
module attributes {stable_mosaic.version = 11 : i64} {
  func.func @midibert_fused_kernel(%arg0: i32, %arg1: i32, %arg2: memref<1x8x4xi32, #tpu.memory_space<vmem>>, %arg3: memref<1x1x8xf32, #tpu.memory_space<vmem>>, %arg4: memref<64x128xbf16, #tpu.memory_space<vmem>>, %arg5: memref<4x128xf32, #tpu.memory_space<vmem>>, %arg6: memref<8x128xf32, #tpu.memory_space<vmem>>, %arg7: memref<128x128xbf16, #tpu.memory_space<vmem>>, %arg8: memref<1x3x4x128x32xbf16, #tpu.memory_space<vmem>>, %arg9: memref<1x3x4x1x32xf32, #tpu.memory_space<vmem>>, %arg10: memref<1x4x32x128xbf16, #tpu.memory_space<vmem>>, %arg11: memref<1x128x256xbf16, #tpu.memory_space<vmem>>, %arg12: memref<1x1x256xf32, #tpu.memory_space<vmem>>, %arg13: memref<1x256x128xbf16, #tpu.memory_space<vmem>>, %arg14: memref<1x6x128xf32, #tpu.memory_space<vmem>>, %arg15: memref<1x8x128xf32, #tpu.memory_space<vmem>>, %arg16: memref<1x1x8x128xf32, #tpu.memory_space<vmem>>, %arg17: memref<1x1x128xf32, #tpu.memory_space<vmem>>, %arg18: memref<8x128xf32, #tpu.memory_space<vmem>>) attributes {dimension_semantics = [#tpu.dimension_semantics<parallel>, #tpu.dimension_semantics<arbitrary>], iteration_bounds = array<i64: 2, 2>, scalar_prefetch = 0 : i64, scratch_operands = 1 : i64, tpu.core_type = #tpu.core_type<tc>, window_params = [{transform_indices = @transform_0, window_bounds = array<i64: 1, 8, 4>}, {transform_indices = @transform_1, window_bounds = array<i64: 1, 1, 8>}, {pipeline_mode = #tpu.pipeline_mode<synchronous>, transform_indices = @transform_2, window_bounds = array<i64: 64, 128>}, {pipeline_mode = #tpu.pipeline_mode<synchronous>, transform_indices = @transform_3, window_bounds = array<i64: 4, 128>}, {pipeline_mode = #tpu.pipeline_mode<synchronous>, transform_indices = @transform_4, window_bounds = array<i64: 8, 128>}, {pipeline_mode = #tpu.pipeline_mode<synchronous>, transform_indices = @transform_5, window_bounds = array<i64: 128, 128>}, {transform_indices = @transform_6, window_bounds = array<i64: 1, 3, 4, 128, 32>}, {transform_indices = @transform_7, window_bounds = array<i64: 1, 3, 4, 1, 32>}, {transform_indices = @transform_8, window_bounds = array<i64: 1, 4, 32, 128>}, {transform_indices = @transform_9, window_bounds = array<i64: 1, 128, 256>}, {transform_indices = @transform_10, window_bounds = array<i64: 1, 1, 256>}, {transform_indices = @transform_11, window_bounds = array<i64: 1, 256, 128>}, {transform_indices = @transform_12, window_bounds = array<i64: 1, 6, 128>}, {transform_indices = @transform_13, window_bounds = array<i64: 1, 8, 128>}, {transform_indices = @transform_14, window_bounds = array<i64: 1, 1, 8, 128>}, {transform_indices = @transform_15, window_bounds = array<i64: 1, 1, 128>}]} {
    %c0 = arith.constant 0 : index
    %c0_0 = arith.constant 0 : index
    %0 = vector.load %arg5[%c0, %c0_0] : memref<4x128xf32, #tpu.memory_space<vmem>>, vector<4x128xf32>
    %c0_i32 = arith.constant 0 : i32
    %1 = arith.cmpi eq, %arg1, %c0_i32 : i32
    %2 = arith.extui %1 : i1 to i32
    %c0_i32_1 = arith.constant 0 : i32
    %3 = arith.cmpi ne, %2, %c0_i32_1 : i32
    scf.if %3 {
      %c0_83 = arith.constant 0 : index
      %c0_84 = arith.constant 0 : index
      %c0_85 = arith.constant 0 : index
      %146 = vector.load %arg2[%c0_83, %c0_84, %c0_85] : memref<1x8x4xi32, #tpu.memory_space<vmem>>, vector<1x8x4xi32>
      %147 = vector.shape_cast %146 : vector<1x8x4xi32> to vector<8x4xi32>
      %148 = tpu.iota {dimensions = array<i32: 1>} : vector<8x64xi32>
      %cst_86 = arith.constant 0.000000e+00 : f32
      %149 = vector.broadcast %cst_86 : f32 to vector<8x64xf32>
      %150 = vector.extract_strided_slice %147 {offsets = [0, 0], sizes = [8, 1], strides = [1, 1]} : vector<8x4xi32> to vector<8x1xi32>
      %c0_i32_87 = arith.constant 0 : i32
      %151 = vector.broadcast %c0_i32_87 : i32 to vector<8x1xi32>
      %152 = arith.addi %150, %151 : vector<8x1xi32>
      %153 = vector.broadcast %152 : vector<8x1xi32> to vector<8x64xi32>
      %154 = arith.cmpi eq, %148, %153 : vector<8x64xi32>
      %155 = arith.extui %154 : vector<8x64xi1> to vector<8x64xi32>
      %156 = arith.sitofp %155 : vector<8x64xi32> to vector<8x64xf32>
      %157 = arith.addf %149, %156 : vector<8x64xf32>
      %158 = vector.extract_strided_slice %147 {offsets = [0, 1], sizes = [8, 1], strides = [1, 1]} : vector<8x4xi32> to vector<8x1xi32>
      %c16_i32 = arith.constant 16 : i32
      %159 = vector.broadcast %c16_i32 : i32 to vector<8x1xi32>
      %160 = arith.addi %158, %159 : vector<8x1xi32>
      %161 = vector.broadcast %160 : vector<8x1xi32> to vector<8x64xi32>
      %162 = arith.cmpi eq, %148, %161 : vector<8x64xi32>
      %163 = arith.extui %162 : vector<8x64xi1> to vector<8x64xi32>
      %164 = arith.sitofp %163 : vector<8x64xi32> to vector<8x64xf32>
      %165 = arith.addf %157, %164 : vector<8x64xf32>
      %166 = vector.extract_strided_slice %147 {offsets = [0, 2], sizes = [8, 1], strides = [1, 1]} : vector<8x4xi32> to vector<8x1xi32>
      %c32_i32 = arith.constant 32 : i32
      %167 = vector.broadcast %c32_i32 : i32 to vector<8x1xi32>
      %168 = arith.addi %166, %167 : vector<8x1xi32>
      %169 = vector.broadcast %168 : vector<8x1xi32> to vector<8x64xi32>
      %170 = arith.cmpi eq, %148, %169 : vector<8x64xi32>
      %171 = arith.extui %170 : vector<8x64xi1> to vector<8x64xi32>
      %172 = arith.sitofp %171 : vector<8x64xi32> to vector<8x64xf32>
      %173 = arith.addf %165, %172 : vector<8x64xf32>
      %174 = vector.extract_strided_slice %147 {offsets = [0, 3], sizes = [8, 1], strides = [1, 1]} : vector<8x4xi32> to vector<8x1xi32>
      %c48_i32 = arith.constant 48 : i32
      %175 = vector.broadcast %c48_i32 : i32 to vector<8x1xi32>
      %176 = arith.addi %174, %175 : vector<8x1xi32>
      %177 = vector.broadcast %176 : vector<8x1xi32> to vector<8x64xi32>
      %178 = arith.cmpi eq, %148, %177 : vector<8x64xi32>
      %179 = arith.extui %178 : vector<8x64xi1> to vector<8x64xi32>
      %180 = arith.sitofp %179 : vector<8x64xi32> to vector<8x64xf32>
      %181 = arith.addf %173, %180 : vector<8x64xf32>
      %182 = arith.truncf %181 : vector<8x64xf32> to vector<8x64xbf16>
      %c0_88 = arith.constant 0 : index
      %c0_89 = arith.constant 0 : index
      %183 = vector.load %arg4[%c0_88, %c0_89] : memref<64x128xbf16, #tpu.memory_space<vmem>>, vector<64x128xbf16>
      %cst_90 = arith.constant dense<0.000000e+00> : vector<8x128xf32>
      %184 = tpu.matmul %182, %183, %cst_90 {dimension_numbers = #tpu.dot_dimension_numbers<[1], [0], [0], [1], [0, 0, 1, 1], [], []>} : vector<8x64xbf16>, vector<64x128xbf16>, vector<8x128xf32> -> vector<8x128xf32>
      %185 = vector.extract_strided_slice %0 {offsets = [0, 0], sizes = [1, 128], strides = [1, 1]} : vector<4x128xf32> to vector<1x128xf32>
      %186 = vector.broadcast %185 : vector<1x128xf32> to vector<8x128xf32>
      %187 = arith.addf %184, %186 : vector<8x128xf32>
      %c0_91 = arith.constant 0 : index
      %c0_92 = arith.constant 0 : index
      %188 = vector.load %arg6[%c0_91, %c0_92] : memref<8x128xf32, #tpu.memory_space<vmem>>, vector<8x128xf32>
      %189 = arith.addf %187, %188 : vector<8x128xf32>
      %190 = vector.extract_strided_slice %0 {offsets = [1, 0], sizes = [1, 128], strides = [1, 1]} : vector<4x128xf32> to vector<1x128xf32>
      %191 = vector.extract_strided_slice %0 {offsets = [2, 0], sizes = [1, 128], strides = [1, 1]} : vector<4x128xf32> to vector<1x128xf32>
      %cst_93 = arith.constant dense<0.000000e+00> : vector<8xf32>
      %192 = vector.multi_reduction <add>, %189, %cst_93 [1] : vector<8x128xf32> to vector<8xf32>
      %193 = vector.shape_cast %192 : vector<8xf32> to vector<8x1xf32>
      %cst_94 = arith.constant 1.280000e+02 : f32
      %194 = vector.broadcast %cst_94 : f32 to vector<8x1xf32>
      %195 = arith.divf %193, %194 : vector<8x1xf32>
      %196 = vector.broadcast %195 : vector<8x1xf32> to vector<8x128xf32>
      %197 = arith.subf %189, %196 : vector<8x128xf32>
      %198 = arith.mulf %197, %197 : vector<8x128xf32>
      %cst_95 = arith.constant dense<0.000000e+00> : vector<8xf32>
      %199 = vector.multi_reduction <add>, %198, %cst_95 [1] : vector<8x128xf32> to vector<8xf32>
      %200 = vector.shape_cast %199 : vector<8xf32> to vector<8x1xf32>
      %cst_96 = arith.constant 1.280000e+02 : f32
      %201 = vector.broadcast %cst_96 : f32 to vector<8x1xf32>
      %202 = arith.divf %200, %201 : vector<8x1xf32>
      %203 = vector.broadcast %195 : vector<8x1xf32> to vector<8x128xf32>
      %204 = arith.subf %189, %203 : vector<8x128xf32>
      %cst_97 = arith.constant 9.99999996E-13 : f32
      %205 = vector.broadcast %cst_97 : f32 to vector<8x1xf32>
      %206 = arith.addf %202, %205 : vector<8x1xf32>
      %207 = math.rsqrt %206 : vector<8x1xf32>
      %208 = vector.broadcast %207 : vector<8x1xf32> to vector<8x128xf32>
      %209 = arith.mulf %204, %208 : vector<8x128xf32>
      %210 = vector.broadcast %190 : vector<1x128xf32> to vector<8x128xf32>
      %211 = arith.mulf %209, %210 : vector<8x128xf32>
      %212 = vector.broadcast %191 : vector<1x128xf32> to vector<8x128xf32>
      %213 = arith.addf %211, %212 : vector<8x128xf32>
      %c0_98 = arith.constant 0 : index
      %c0_99 = arith.constant 0 : index
      %214 = vector.load %arg18[%c0_98, %c0_99] : memref<8x128xf32, #tpu.memory_space<vmem>>, vector<8x128xf32>
      tpu.vector_store %arg18[%c0_98, %c0_99], %213 {strides = array<i32>} : memref<8x128xf32, #tpu.memory_space<vmem>>, vector<8x128xf32>,
      %c0_100 = arith.constant 0 : index
      %c0_101 = arith.constant 0 : index
      %c0_102 = arith.constant 0 : index
      %215 = vector.load %arg15[%c0_100, %c0_101, %c0_102] : memref<1x8x128xf32, #tpu.memory_space<vmem>>, vector<1x8x128xf32>
      %216 = vector.shape_cast %215 : vector<1x8x128xf32> to vector<8x128xf32>
      %217 = vector.shape_cast %213 : vector<8x128xf32> to vector<1x8x128xf32>
      tpu.vector_store %arg15[%c0_100, %c0_101, %c0_102], %217 {strides = array<i32>} : memref<1x8x128xf32, #tpu.memory_space<vmem>>, vector<1x8x128xf32>,
    } else {
    }
    %c0_2 = arith.constant 0 : index
    %c0_3 = arith.constant 0 : index
    %4 = vector.load %arg18[%c0_2, %c0_3] : memref<8x128xf32, #tpu.memory_space<vmem>>, vector<8x128xf32>
    %5 = arith.truncf %4 : vector<8x128xf32> to vector<8x128xbf16>
    %6 = vector.shape_cast %5 : vector<8x128xbf16> to vector<1x8x128xbf16>
    %7 = vector.broadcast %6 : vector<1x8x128xbf16> to vector<4x8x128xbf16>
    %c0_4 = arith.constant 0 : index
    %c0_5 = arith.constant 0 : index
    %c0_6 = arith.constant 0 : index
    %c0_7 = arith.constant 0 : index
    %c0_8 = arith.constant 0 : index
    %8 = vector.load %arg8[%c0_4, %c0_5, %c0_6, %c0_7, %c0_8] : memref<1x3x4x128x32xbf16, #tpu.memory_space<vmem>>, vector<1x1x4x128x32xbf16>
    %9 = vector.shape_cast %8 : vector<1x1x4x128x32xbf16> to vector<4x128x32xbf16>
    "tpu.trace_start"() <{level = 10 : i32, message = "hsk,hkd->hsd"}> : () -> ()
    %cst = arith.constant dense<0.000000e+00> : vector<4x8x32xf32>
    %10 = tpu.matmul %7, %9, %cst {dimension_numbers = #tpu.dot_dimension_numbers<[2], [1], [1], [2], [0, 0, 0, 1, 1, 2], [0], [0]>} : vector<4x8x128xbf16>, vector<4x128x32xbf16>, vector<4x8x32xf32> -> vector<4x8x32xf32>
    "tpu.trace_stop"() : () -> ()
    %c0_9 = arith.constant 0 : index
    %c0_10 = arith.constant 0 : index
    %c0_11 = arith.constant 0 : index
    %c0_12 = arith.constant 0 : index
    %c0_13 = arith.constant 0 : index
    %11 = vector.load %arg9[%c0_9, %c0_10, %c0_11, %c0_12, %c0_13] : memref<1x3x4x1x32xf32, #tpu.memory_space<vmem>>, vector<1x1x4x1x32xf32>
    %12 = vector.shape_cast %11 : vector<1x1x4x1x32xf32> to vector<4x1x32xf32>
    %13 = vector.broadcast %12 : vector<4x1x32xf32> to vector<4x8x32xf32>
    %14 = arith.addf %10, %13 : vector<4x8x32xf32>
    %c0_14 = arith.constant 0 : index
    %c1 = arith.constant 1 : index
    %c0_15 = arith.constant 0 : index
    %c0_16 = arith.constant 0 : index
    %c0_17 = arith.constant 0 : index
    %15 = vector.load %arg8[%c0_14, %c1, %c0_15, %c0_16, %c0_17] : memref<1x3x4x128x32xbf16, #tpu.memory_space<vmem>>, vector<1x1x4x128x32xbf16>
    %16 = vector.shape_cast %15 : vector<1x1x4x128x32xbf16> to vector<4x128x32xbf16>
    "tpu.trace_start"() <{level = 10 : i32, message = "hsk,hkd->hsd"}> : () -> ()
    %cst_18 = arith.constant dense<0.000000e+00> : vector<4x8x32xf32>
    %17 = tpu.matmul %7, %16, %cst_18 {dimension_numbers = #tpu.dot_dimension_numbers<[2], [1], [1], [2], [0, 0, 0, 1, 1, 2], [0], [0]>} : vector<4x8x128xbf16>, vector<4x128x32xbf16>, vector<4x8x32xf32> -> vector<4x8x32xf32>
    "tpu.trace_stop"() : () -> ()
    %c0_19 = arith.constant 0 : index
    %c1_20 = arith.constant 1 : index
    %c0_21 = arith.constant 0 : index
    %c0_22 = arith.constant 0 : index
    %c0_23 = arith.constant 0 : index
    %18 = vector.load %arg9[%c0_19, %c1_20, %c0_21, %c0_22, %c0_23] : memref<1x3x4x1x32xf32, #tpu.memory_space<vmem>>, vector<1x1x4x1x32xf32>
    %19 = vector.shape_cast %18 : vector<1x1x4x1x32xf32> to vector<4x1x32xf32>
    %20 = vector.broadcast %19 : vector<4x1x32xf32> to vector<4x8x32xf32>
    %21 = arith.addf %17, %20 : vector<4x8x32xf32>
    %c0_24 = arith.constant 0 : index
    %c2 = arith.constant 2 : index
    %c0_25 = arith.constant 0 : index
    %c0_26 = arith.constant 0 : index
    %c0_27 = arith.constant 0 : index
    %22 = vector.load %arg8[%c0_24, %c2, %c0_25, %c0_26, %c0_27] : memref<1x3x4x128x32xbf16, #tpu.memory_space<vmem>>, vector<1x1x4x128x32xbf16>
    %23 = vector.shape_cast %22 : vector<1x1x4x128x32xbf16> to vector<4x128x32xbf16>
    "tpu.trace_start"() <{level = 10 : i32, message = "hsk,hkd->hsd"}> : () -> ()
    %cst_28 = arith.constant dense<0.000000e+00> : vector<4x8x32xf32>
    %24 = tpu.matmul %7, %23, %cst_28 {dimension_numbers = #tpu.dot_dimension_numbers<[2], [1], [1], [2], [0, 0, 0, 1, 1, 2], [0], [0]>} : vector<4x8x128xbf16>, vector<4x128x32xbf16>, vector<4x8x32xf32> -> vector<4x8x32xf32>
    "tpu.trace_stop"() : () -> ()
    %c0_29 = arith.constant 0 : index
    %c2_30 = arith.constant 2 : index
    %c0_31 = arith.constant 0 : index
    %c0_32 = arith.constant 0 : index
    %c0_33 = arith.constant 0 : index
    %25 = vector.load %arg9[%c0_29, %c2_30, %c0_31, %c0_32, %c0_33] : memref<1x3x4x1x32xf32, #tpu.memory_space<vmem>>, vector<1x1x4x1x32xf32>
    %26 = vector.shape_cast %25 : vector<1x1x4x1x32xf32> to vector<4x1x32xf32>
    %27 = vector.broadcast %26 : vector<4x1x32xf32> to vector<4x8x32xf32>
    %28 = arith.addf %24, %27 : vector<4x8x32xf32>
    %29 = arith.truncf %14 : vector<4x8x32xf32> to vector<4x8x32xbf16>
    %30 = arith.truncf %21 : vector<4x8x32xf32> to vector<4x8x32xbf16>
    "tpu.trace_start"() <{level = 10 : i32, message = "hqd,hkd->hqk"}> : () -> ()
    %cst_34 = arith.constant dense<0.000000e+00> : vector<4x8x8xf32>
    %31 = tpu.matmul %29, %30, %cst_34 {dimension_numbers = #tpu.dot_dimension_numbers<[2], [2], [1], [1], [0, 0, 0, 1, 1, 1], [0], [0]>} : vector<4x8x32xbf16>, vector<4x8x32xbf16>, vector<4x8x8xf32> -> vector<4x8x8xf32>
    "tpu.trace_stop"() : () -> ()
    %cst_35 = arith.constant 0.176776692 : f32
    %32 = vector.broadcast %cst_35 : f32 to vector<4x8x8xf32>
    %33 = arith.mulf %31, %32 : vector<4x8x8xf32>
    %c0_36 = arith.constant 0 : index
    %c0_37 = arith.constant 0 : index
    %c0_38 = arith.constant 0 : index
    %34 = vector.load %arg3[%c0_36, %c0_37, %c0_38] : memref<1x1x8xf32, #tpu.memory_space<vmem>>, vector<1x1x8xf32>
    %35 = vector.shape_cast %34 : vector<1x1x8xf32> to vector<1x8xf32>
    %36 = vector.shape_cast %35 : vector<1x8xf32> to vector<1x1x8xf32>
    %37 = vector.broadcast %36 : vector<1x1x8xf32> to vector<4x8x8xf32>
    %38 = arith.addf %33, %37 : vector<4x8x8xf32>
    %cst_39 = arith.constant dense<0xFF800000> : vector<4x8xf32>
    %39 = vector.multi_reduction <maximumf>, %38, %cst_39 [2] : vector<4x8x8xf32> to vector<4x8xf32>
    %40 = vector.shape_cast %39 : vector<4x8xf32> to vector<4x8x1xf32>
    %41 = vector.broadcast %40 : vector<4x8x1xf32> to vector<4x8x8xf32>
    %42 = arith.subf %38, %41 : vector<4x8x8xf32>
    %43 = math.exp %42 : vector<4x8x8xf32>
    %cst_40 = arith.constant dense<0.000000e+00> : vector<4x8xf32>
    %44 = vector.multi_reduction <add>, %43, %cst_40 [2] : vector<4x8x8xf32> to vector<4x8xf32>
    %45 = vector.shape_cast %44 : vector<4x8xf32> to vector<4x8x1xf32>
    %46 = vector.broadcast %45 : vector<4x8x1xf32> to vector<4x8x8xf32>
    %47 = arith.divf %43, %46 : vector<4x8x8xf32>
    %48 = arith.truncf %47 : vector<4x8x8xf32> to vector<4x8x8xbf16>
    %49 = arith.truncf %28 : vector<4x8x32xf32> to vector<4x8x32xbf16>
    "tpu.trace_start"() <{level = 10 : i32, message = "hqk,hkd->hqd"}> : () -> ()
    %cst_41 = arith.constant dense<0.000000e+00> : vector<4x8x32xf32>
    %50 = tpu.matmul %48, %49, %cst_41 {dimension_numbers = #tpu.dot_dimension_numbers<[2], [1], [1], [2], [0, 0, 0, 1, 1, 2], [0], [0]>} : vector<4x8x8xbf16>, vector<4x8x32xbf16>, vector<4x8x32xf32> -> vector<4x8x32xf32>
    "tpu.trace_stop"() : () -> ()
    %c0_42 = arith.constant 0 : index
    %c0_43 = arith.constant 0 : index
    %c0_44 = arith.constant 0 : index
    %51 = vector.load %arg14[%c0_42, %c0_43, %c0_44] : memref<1x6x128xf32, #tpu.memory_space<vmem>>, vector<1x6x128xf32>
    %52 = vector.shape_cast %51 : vector<1x6x128xf32> to vector<6x128xf32>
    %53 = arith.truncf %50 : vector<4x8x32xf32> to vector<4x8x32xbf16>
    %c0_45 = arith.constant 0 : index
    %c0_46 = arith.constant 0 : index
    %c0_47 = arith.constant 0 : index
    %c0_48 = arith.constant 0 : index
    %54 = vector.load %arg10[%c0_45, %c0_46, %c0_47, %c0_48] : memref<1x4x32x128xbf16, #tpu.memory_space<vmem>>, vector<1x4x32x128xbf16>
    %55 = vector.shape_cast %54 : vector<1x4x32x128xbf16> to vector<4x32x128xbf16>
    "tpu.trace_start"() <{level = 10 : i32, message = "hsd,hdk->hsk"}> : () -> ()
    %cst_49 = arith.constant dense<0.000000e+00> : vector<4x8x128xf32>
    %56 = tpu.matmul %53, %55, %cst_49 {dimension_numbers = #tpu.dot_dimension_numbers<[2], [1], [1], [2], [0, 0, 0, 1, 1, 2], [0], [0]>} : vector<4x8x32xbf16>, vector<4x32x128xbf16>, vector<4x8x128xf32> -> vector<4x8x128xf32>
    "tpu.trace_stop"() : () -> ()
    %cst_50 = arith.constant dense<0.000000e+00> : vector<8x128xf32>
    %57 = vector.multi_reduction <add>, %56, %cst_50 [0] : vector<4x8x128xf32> to vector<8x128xf32>
    %58 = vector.extract_strided_slice %52 {offsets = [0, 0], sizes = [1, 128], strides = [1, 1]} : vector<6x128xf32> to vector<1x128xf32>
    %59 = vector.broadcast %58 : vector<1x128xf32> to vector<8x128xf32>
    %60 = arith.addf %57, %59 : vector<8x128xf32>
    %61 = arith.addf %4, %60 : vector<8x128xf32>
    %62 = vector.extract_strided_slice %52 {offsets = [1, 0], sizes = [1, 128], strides = [1, 1]} : vector<6x128xf32> to vector<1x128xf32>
    %63 = vector.extract_strided_slice %52 {offsets = [2, 0], sizes = [1, 128], strides = [1, 1]} : vector<6x128xf32> to vector<1x128xf32>
    %cst_51 = arith.constant dense<0.000000e+00> : vector<8xf32>
    %64 = vector.multi_reduction <add>, %61, %cst_51 [1] : vector<8x128xf32> to vector<8xf32>
    %65 = vector.shape_cast %64 : vector<8xf32> to vector<8x1xf32>
    %cst_52 = arith.constant 1.280000e+02 : f32
    %66 = vector.broadcast %cst_52 : f32 to vector<8x1xf32>
    %67 = arith.divf %65, %66 : vector<8x1xf32>
    %68 = vector.broadcast %67 : vector<8x1xf32> to vector<8x128xf32>
    %69 = arith.subf %61, %68 : vector<8x128xf32>
    %70 = arith.mulf %69, %69 : vector<8x128xf32>
    %cst_53 = arith.constant dense<0.000000e+00> : vector<8xf32>
    %71 = vector.multi_reduction <add>, %70, %cst_53 [1] : vector<8x128xf32> to vector<8xf32>
    %72 = vector.shape_cast %71 : vector<8xf32> to vector<8x1xf32>
    %cst_54 = arith.constant 1.280000e+02 : f32
    %73 = vector.broadcast %cst_54 : f32 to vector<8x1xf32>
    %74 = arith.divf %72, %73 : vector<8x1xf32>
    %75 = vector.broadcast %67 : vector<8x1xf32> to vector<8x128xf32>
    %76 = arith.subf %61, %75 : vector<8x128xf32>
    %cst_55 = arith.constant 9.99999996E-13 : f32
    %77 = vector.broadcast %cst_55 : f32 to vector<8x1xf32>
    %78 = arith.addf %74, %77 : vector<8x1xf32>
    %79 = math.rsqrt %78 : vector<8x1xf32>
    %80 = vector.broadcast %79 : vector<8x1xf32> to vector<8x128xf32>
    %81 = arith.mulf %76, %80 : vector<8x128xf32>
    %82 = vector.broadcast %62 : vector<1x128xf32> to vector<8x128xf32>
    %83 = arith.mulf %81, %82 : vector<8x128xf32>
    %84 = vector.broadcast %63 : vector<1x128xf32> to vector<8x128xf32>
    %85 = arith.addf %83, %84 : vector<8x128xf32>
    %86 = arith.truncf %85 : vector<8x128xf32> to vector<8x128xbf16>
    %c0_56 = arith.constant 0 : index
    %c0_57 = arith.constant 0 : index
    %c0_58 = arith.constant 0 : index
    %87 = vector.load %arg11[%c0_56, %c0_57, %c0_58] : memref<1x128x256xbf16, #tpu.memory_space<vmem>>, vector<1x128x256xbf16>
    %88 = vector.shape_cast %87 : vector<1x128x256xbf16> to vector<128x256xbf16>
    %cst_59 = arith.constant dense<0.000000e+00> : vector<8x256xf32>
    %89 = tpu.matmul %86, %88, %cst_59 {dimension_numbers = #tpu.dot_dimension_numbers<[1], [0], [0], [1], [0, 0, 1, 1], [], []>} : vector<8x128xbf16>, vector<128x256xbf16>, vector<8x256xf32> -> vector<8x256xf32>
    %c0_60 = arith.constant 0 : index
    %c0_61 = arith.constant 0 : index
    %c0_62 = arith.constant 0 : index
    %90 = vector.load %arg12[%c0_60, %c0_61, %c0_62] : memref<1x1x256xf32, #tpu.memory_space<vmem>>, vector<1x1x256xf32>
    %91 = vector.shape_cast %90 : vector<1x1x256xf32> to vector<1x256xf32>
    %92 = vector.broadcast %91 : vector<1x256xf32> to vector<8x256xf32>
    %93 = arith.addf %89, %92 : vector<8x256xf32>
    %94 = arith.mulf %93, %93 : vector<8x256xf32>
    %95 = arith.mulf %93, %94 : vector<8x256xf32>
    %cst_63 = arith.constant 4.471500e-02 : f32
    %96 = vector.broadcast %cst_63 : f32 to vector<8x256xf32>
    %97 = arith.mulf %96, %95 : vector<8x256xf32>
    %98 = arith.addf %93, %97 : vector<8x256xf32>
    %cst_64 = arith.constant 0.797884583 : f32
    %99 = vector.broadcast %cst_64 : f32 to vector<8x256xf32>
    %100 = arith.mulf %99, %98 : vector<8x256xf32>
    %101 = math.tanh %100 : vector<8x256xf32>
    %cst_65 = arith.constant 1.000000e+00 : f32
    %102 = vector.broadcast %cst_65 : f32 to vector<8x256xf32>
    %103 = arith.addf %102, %101 : vector<8x256xf32>
    %cst_66 = arith.constant 5.000000e-01 : f32
    %104 = vector.broadcast %cst_66 : f32 to vector<8x256xf32>
    %105 = arith.mulf %104, %103 : vector<8x256xf32>
    %106 = arith.mulf %93, %105 : vector<8x256xf32>
    %107 = arith.truncf %106 : vector<8x256xf32> to vector<8x256xbf16>
    %c0_67 = arith.constant 0 : index
    %c0_68 = arith.constant 0 : index
    %c0_69 = arith.constant 0 : index
    %108 = vector.load %arg13[%c0_67, %c0_68, %c0_69] : memref<1x256x128xbf16, #tpu.memory_space<vmem>>, vector<1x256x128xbf16>
    %109 = vector.shape_cast %108 : vector<1x256x128xbf16> to vector<256x128xbf16>
    %cst_70 = arith.constant dense<0.000000e+00> : vector<8x128xf32>
    %110 = tpu.matmul %107, %109, %cst_70 {dimension_numbers = #tpu.dot_dimension_numbers<[1], [0], [0], [1], [0, 0, 1, 1], [], []>} : vector<8x256xbf16>, vector<256x128xbf16>, vector<8x128xf32> -> vector<8x128xf32>
    %111 = vector.extract_strided_slice %52 {offsets = [3, 0], sizes = [1, 128], strides = [1, 1]} : vector<6x128xf32> to vector<1x128xf32>
    %112 = vector.broadcast %111 : vector<1x128xf32> to vector<8x128xf32>
    %113 = arith.addf %110, %112 : vector<8x128xf32>
    %114 = arith.addf %85, %113 : vector<8x128xf32>
    %115 = vector.extract_strided_slice %52 {offsets = [4, 0], sizes = [1, 128], strides = [1, 1]} : vector<6x128xf32> to vector<1x128xf32>
    %116 = vector.extract_strided_slice %52 {offsets = [5, 0], sizes = [1, 128], strides = [1, 1]} : vector<6x128xf32> to vector<1x128xf32>
    %cst_71 = arith.constant dense<0.000000e+00> : vector<8xf32>
    %117 = vector.multi_reduction <add>, %114, %cst_71 [1] : vector<8x128xf32> to vector<8xf32>
    %118 = vector.shape_cast %117 : vector<8xf32> to vector<8x1xf32>
    %cst_72 = arith.constant 1.280000e+02 : f32
    %119 = vector.broadcast %cst_72 : f32 to vector<8x1xf32>
    %120 = arith.divf %118, %119 : vector<8x1xf32>
    %121 = vector.broadcast %120 : vector<8x1xf32> to vector<8x128xf32>
    %122 = arith.subf %114, %121 : vector<8x128xf32>
    %123 = arith.mulf %122, %122 : vector<8x128xf32>
    %cst_73 = arith.constant dense<0.000000e+00> : vector<8xf32>
    %124 = vector.multi_reduction <add>, %123, %cst_73 [1] : vector<8x128xf32> to vector<8xf32>
    %125 = vector.shape_cast %124 : vector<8xf32> to vector<8x1xf32>
    %cst_74 = arith.constant 1.280000e+02 : f32
    %126 = vector.broadcast %cst_74 : f32 to vector<8x1xf32>
    %127 = arith.divf %125, %126 : vector<8x1xf32>
    %128 = vector.broadcast %120 : vector<8x1xf32> to vector<8x128xf32>
    %129 = arith.subf %114, %128 : vector<8x128xf32>
    %cst_75 = arith.constant 9.99999996E-13 : f32
    %130 = vector.broadcast %cst_75 : f32 to vector<8x1xf32>
    %131 = arith.addf %127, %130 : vector<8x1xf32>
    %132 = math.rsqrt %131 : vector<8x1xf32>
    %133 = vector.broadcast %132 : vector<8x1xf32> to vector<8x128xf32>
    %134 = arith.mulf %129, %133 : vector<8x128xf32>
    %135 = vector.broadcast %115 : vector<1x128xf32> to vector<8x128xf32>
    %136 = arith.mulf %134, %135 : vector<8x128xf32>
    %137 = vector.broadcast %116 : vector<1x128xf32> to vector<8x128xf32>
    %138 = arith.addf %136, %137 : vector<8x128xf32>
    %c0_76 = arith.constant 0 : index
    %c0_77 = arith.constant 0 : index
    %139 = vector.load %arg18[%c0_76, %c0_77] : memref<8x128xf32, #tpu.memory_space<vmem>>, vector<8x128xf32>
    tpu.vector_store %arg18[%c0_76, %c0_77], %138 {strides = array<i32>} : memref<8x128xf32, #tpu.memory_space<vmem>>, vector<8x128xf32>,
    %c0_78 = arith.constant 0 : index
    %c0_79 = arith.constant 0 : index
    %c0_80 = arith.constant 0 : index
    %c0_81 = arith.constant 0 : index
    %140 = vector.load %arg16[%c0_78, %c0_79, %c0_80, %c0_81] : memref<1x1x8x128xf32, #tpu.memory_space<vmem>>, vector<1x1x8x128xf32>
    %141 = vector.shape_cast %140 : vector<1x1x8x128xf32> to vector<8x128xf32>
    %142 = vector.shape_cast %138 : vector<8x128xf32> to vector<1x1x8x128xf32>
    tpu.vector_store %arg16[%c0_78, %c0_79, %c0_80, %c0_81], %142 {strides = array<i32>} : memref<1x1x8x128xf32, #tpu.memory_space<vmem>>, vector<1x1x8x128xf32>,
    %c1_i32 = arith.constant 1 : i32
    %143 = arith.cmpi eq, %arg1, %c1_i32 : i32
    %144 = arith.extui %143 : i1 to i32
    %c0_i32_82 = arith.constant 0 : i32
    %145 = arith.cmpi ne, %144, %c0_i32_82 : i32
    scf.if %145 {
      %146 = vector.extract_strided_slice %138 {offsets = [0, 0], sizes = [1, 128], strides = [1, 1]} : vector<8x128xf32> to vector<1x128xf32>
      %147 = arith.truncf %146 : vector<1x128xf32> to vector<1x128xbf16>
      %c0_83 = arith.constant 0 : index
      %c0_84 = arith.constant 0 : index
      %148 = vector.load %arg7[%c0_83, %c0_84] : memref<128x128xbf16, #tpu.memory_space<vmem>>, vector<128x128xbf16>
      %cst_85 = arith.constant dense<0.000000e+00> : vector<1x128xf32>
      %149 = tpu.matmul %147, %148, %cst_85 {dimension_numbers = #tpu.dot_dimension_numbers<[1], [0], [0], [1], [0, 0, 1, 1], [], []>} : vector<1x128xbf16>, vector<128x128xbf16>, vector<1x128xf32> -> vector<1x128xf32>
      %150 = vector.extract_strided_slice %0 {offsets = [3, 0], sizes = [1, 128], strides = [1, 1]} : vector<4x128xf32> to vector<1x128xf32>
      %151 = arith.addf %149, %150 : vector<1x128xf32>
      %152 = math.tanh %151 : vector<1x128xf32>
      %c0_86 = arith.constant 0 : index
      %c0_87 = arith.constant 0 : index
      %c0_88 = arith.constant 0 : index
      %153 = vector.load %arg17[%c0_86, %c0_87, %c0_88] : memref<1x1x128xf32, #tpu.memory_space<vmem>>, vector<1x1x128xf32>
      %154 = vector.shape_cast %153 : vector<1x1x128xf32> to vector<1x128xf32>
      %155 = vector.shape_cast %152 : vector<1x128xf32> to vector<1x1x128xf32>
      tpu.vector_store %arg17[%c0_86, %c0_87, %c0_88], %155 {strides = array<i32>} : memref<1x1x128xf32, #tpu.memory_space<vmem>>, vector<1x1x128xf32>,
    } else {
    }
    return
  }
  func.func @transform_0(%arg0: i32, %arg1: i32) -> (i32, i32, i32) {
    %c0_i32 = arith.constant 0 : i32
    %c0_i32_0 = arith.constant 0 : i32
    %c0_i32_1 = arith.constant 0 : i32
    return %arg0, %c0_i32, %c0_i32_0 : i32, i32, i32
  }
  func.func @transform_1(%arg0: i32, %arg1: i32) -> (i32, i32, i32) {
    %c0_i32 = arith.constant 0 : i32
    %c0_i32_0 = arith.constant 0 : i32
    %c0_i32_1 = arith.constant 0 : i32
    return %arg0, %c0_i32, %c0_i32_0 : i32, i32, i32
  }
  func.func @transform_2(%arg0: i32, %arg1: i32) -> (i32, i32) {
    %c0_i32 = arith.constant 0 : i32
    %c0_i32_0 = arith.constant 0 : i32
    %c0_i32_1 = arith.constant 0 : i32
    return %c0_i32, %c0_i32_0 : i32, i32
  }
  func.func @transform_3(%arg0: i32, %arg1: i32) -> (i32, i32) {
    %c0_i32 = arith.constant 0 : i32
    %c0_i32_0 = arith.constant 0 : i32
    %c0_i32_1 = arith.constant 0 : i32
    return %c0_i32, %c0_i32_0 : i32, i32
  }
  func.func @transform_4(%arg0: i32, %arg1: i32) -> (i32, i32) {
    %c0_i32 = arith.constant 0 : i32
    %c0_i32_0 = arith.constant 0 : i32
    %c0_i32_1 = arith.constant 0 : i32
    return %c0_i32, %c0_i32_0 : i32, i32
  }
  func.func @transform_5(%arg0: i32, %arg1: i32) -> (i32, i32) {
    %c0_i32 = arith.constant 0 : i32
    %c0_i32_0 = arith.constant 0 : i32
    %c0_i32_1 = arith.constant 0 : i32
    return %c0_i32, %c0_i32_0 : i32, i32
  }
  func.func @transform_6(%arg0: i32, %arg1: i32) -> (i32, i32, i32, i32, i32) {
    %c0_i32 = arith.constant 0 : i32
    %c0_i32_0 = arith.constant 0 : i32
    %c0_i32_1 = arith.constant 0 : i32
    %c0_i32_2 = arith.constant 0 : i32
    %c0_i32_3 = arith.constant 0 : i32
    return %arg1, %c0_i32, %c0_i32_0, %c0_i32_1, %c0_i32_2 : i32, i32, i32, i32, i32
  }
  func.func @transform_7(%arg0: i32, %arg1: i32) -> (i32, i32, i32, i32, i32) {
    %c0_i32 = arith.constant 0 : i32
    %c0_i32_0 = arith.constant 0 : i32
    %c0_i32_1 = arith.constant 0 : i32
    %c0_i32_2 = arith.constant 0 : i32
    %c0_i32_3 = arith.constant 0 : i32
    return %arg1, %c0_i32, %c0_i32_0, %c0_i32_1, %c0_i32_2 : i32, i32, i32, i32, i32
  }
  func.func @transform_8(%arg0: i32, %arg1: i32) -> (i32, i32, i32, i32) {
    %c0_i32 = arith.constant 0 : i32
    %c0_i32_0 = arith.constant 0 : i32
    %c0_i32_1 = arith.constant 0 : i32
    %c0_i32_2 = arith.constant 0 : i32
    return %arg1, %c0_i32, %c0_i32_0, %c0_i32_1 : i32, i32, i32, i32
  }
  func.func @transform_9(%arg0: i32, %arg1: i32) -> (i32, i32, i32) {
    %c0_i32 = arith.constant 0 : i32
    %c0_i32_0 = arith.constant 0 : i32
    %c0_i32_1 = arith.constant 0 : i32
    return %arg1, %c0_i32, %c0_i32_0 : i32, i32, i32
  }
  func.func @transform_10(%arg0: i32, %arg1: i32) -> (i32, i32, i32) {
    %c0_i32 = arith.constant 0 : i32
    %c0_i32_0 = arith.constant 0 : i32
    %c0_i32_1 = arith.constant 0 : i32
    return %arg1, %c0_i32, %c0_i32_0 : i32, i32, i32
  }
  func.func @transform_11(%arg0: i32, %arg1: i32) -> (i32, i32, i32) {
    %c0_i32 = arith.constant 0 : i32
    %c0_i32_0 = arith.constant 0 : i32
    %c0_i32_1 = arith.constant 0 : i32
    return %arg1, %c0_i32, %c0_i32_0 : i32, i32, i32
  }
  func.func @transform_12(%arg0: i32, %arg1: i32) -> (i32, i32, i32) {
    %c0_i32 = arith.constant 0 : i32
    %c0_i32_0 = arith.constant 0 : i32
    %c0_i32_1 = arith.constant 0 : i32
    return %arg1, %c0_i32, %c0_i32_0 : i32, i32, i32
  }
  func.func @transform_13(%arg0: i32, %arg1: i32) -> (i32, i32, i32) {
    %c0_i32 = arith.constant 0 : i32
    %c0_i32_0 = arith.constant 0 : i32
    %c0_i32_1 = arith.constant 0 : i32
    return %arg0, %c0_i32, %c0_i32_0 : i32, i32, i32
  }
  func.func @transform_14(%arg0: i32, %arg1: i32) -> (i32, i32, i32, i32) {
    %c0_i32 = arith.constant 0 : i32
    %c0_i32_0 = arith.constant 0 : i32
    %c0_i32_1 = arith.constant 0 : i32
    return %arg1, %arg0, %c0_i32, %c0_i32_0 : i32, i32, i32, i32
  }
  func.func @transform_15(%arg0: i32, %arg1: i32) -> (i32, i32, i32) {
    %c0_i32 = arith.constant 0 : i32
    %c0_i32_0 = arith.constant 0 : i32
    %c0_i32_1 = arith.constant 0 : i32
    return %arg0, %c0_i32, %c0_i32_0 : i32, i32, i32
  }
}

</mosaic_0001>

<bundles_post_ra>
// kernel: midibert_forward.1
= control target key start
LH: loop header
LB: loop body
LE: loop exit
PB: predicated region body
PF: predicated region fallthrough
CT: control target
= control target key end

     0   :  { %s5647_s0 = inlined_call_operand.vmem [shape: s32[2,8,4], index: 0, kind: input, shape index: {}]   ;;  %s5648_s1 = inlined_call_operand.vmem [shape: f32[2,1,8], index: 1, kind: input, shape index: {}]   ;;  %s5649_s2 = inlined_call_operand.vmem [shape: bf16[64,128], index: 2, kind: input, shape index: {}]   ;;  %s5650_s3 = inlined_call_operand.vmem [shape: f32[4,128], index: 3, kind: input, shape index: {}]   ;;  %s5651_s4 = inlined_call_operand.vmem [shape: f32[8,128], index: 4, kind: input, shape index: {}]   ;;  %s5652_s5 = inlined_call_operand.vmem [shape: bf16[128,128], index: 5, kind: input, shape index: {}]   ;;  %s5653_s6 = inlined_call_operand.vmem [shape: bf16[2,3,4,128,32], index: 6, kind: input, shape index: {}]   ;;  %s5654_s7 = inlined_call_operand.vmem [shape: f32[2,3,4,1,32], index: 7, kind: input, shape index: {}]   ;;  %s5655_s8 = inlined_call_operand.vmem [shape: bf16[2,4,32,128], index: 8, kind: input, shape index: {}]   ;;  %s5656_s9 = inlined_call_operand.vmem [shape: bf16[2,128,256], index: 9, kind: input, shape index: {}]   ;;  %s5657_s10 = inlined_call_operand.vmem [shape: f32[2,1,256], index: 10, kind: input, shape index: {}]   ;;  %s5658_s11 = inlined_call_operand.vmem [shape: bf16[2,256,128], index: 11, kind: input, shape index: {}]   ;;  %s5659_s12 = inlined_call_operand.vmem [shape: f32[2,6,128], index: 12, kind: input, shape index: {}]   ;;  %s5660_s13 = inlined_call_operand.hbm [shape: f32[2,8,128], index: 13, kind: output, shape index: {0}]   ;;  %s5661_s14 = inlined_call_operand.vmem [shape: f32[2,2,8,128], index: 14, kind: output, shape index: {1}]   ;;  %s5662_s15 = inlined_call_operand.hbm [shape: f32[2,1,128], index: 15, kind: output, shape index: {2}]  }
   0x1   :  { %5680 = sst [smem:[#allocation21_spill]] %s5647_s0 }
   0x2   :  { %5681 = sst [smem:[#allocation22_spill]] %s5648_s1 }
   0x3   :  { %5682 = sst [smem:[#allocation23_spill]] %s5649_s2 }
   0x4   :  { %5683 = sst [smem:[#allocation24_spill]] %s5650_s3 }
   0x5   :  { %5684 = sst [smem:[#allocation25_spill]] %s5651_s4 }
   0x6   :  { %5685 = sst [smem:[#allocation26_spill]] %s5652_s5 }
   0x7   :  { %5686 = sst [smem:[#allocation27_spill]] %s5653_s6 }
   0x8   :  { %5687 = sst [smem:[#allocation28_spill]] %s5654_s7 }
   0x9   :  { %5688 = sst [smem:[#allocation29_spill]] %s5655_s8 }
   0xa   :  { %5689 = sst [smem:[#allocation30_spill]] %s5656_s9 }
   0xb   :  { %5690 = sst [smem:[#allocation31_spill]] %s5660_s13 }
   0xc   :  { %5691 = sst [smem:[#allocation32_spill]] %s5662_s15 }
   0xd   :  { %21 = vsyncpa [#allocation4], 0 }
   0xe   :  { %23 = vsyncpa [#allocation4 + $0x1], 0 }
   0xf   :  { %24 = vsyncpa [#allocation6], 0 }
  0x10   :  { %26 = vsyncpa [#allocation6 + $0x1], 0  ;;  %s4995_s18 = smov 0   ;;  %s4997_s19 = smov 0  }
  0x11   :  { %s4999_s20 = smov 0   ;;  %s5001_s21 = smov 0  }
  0x12   :  { %s5003_s22 = smov 0   ;;  %s5005_s23 = smov 0  }
  0x13   :  { %s5007_s24 = smov 0   ;;  %s5009_s25 = smov 0  }
  0x14 LB: > { %5692 = sst [smem:[#allocation9_spill]] %s4872_s18  ;;  %s3629_s26 = sadd.s32 4294967295, %s4900_s25   ;;  %s4900_s25 = sphi %s5009_s25, %s32_s25   ;;  %s4896_s24 = sphi %s5007_s24, %s5733_s24   ;;  %s4892_s23 = sphi %s5005_s23, %s5732_s23   ;;  %s4888_s22 = sphi %s5003_s22, %s5731_s22   ;;  %s4884_s21 = sphi %s5001_s21, %s5730_s21   ;;  %s4880_s20 = sphi %s4999_s20, %s5729_s20   ;;  %s4876_s19 = sphi %s4997_s19, %s5728_s19   ;;  %s4872_s18 = sphi %s4995_s18, %s5727_s18  }
  0x15   : > { %5693 = sst [smem:[#allocation10_spill]] %s4876_s19  ;;  %s3630_s27 = sadd.s32 4294967294, %s4900_s25  }
  0x16   : > { %5694 = sst [smem:[#allocation11_spill]] %s4880_s20  ;;  %s41_s28 = sadd.s32 1, %s4892_s23 }
  0x17   : > { %5695 = sst [smem:[#allocation12_spill]] %s4888_s22  ;;  %p42_p0 = scmp.ge.s32.totalorder %s41_s28, 2 }
  0x18   : > { %5696 = sst [smem:[#allocation13_spill]] %s4892_s23  ;;  %s44_s29 = sadd.s32 1, %s4896_s24 }
  0x19   : > { %5697 = sst [smem:[#allocation14_spill]] %s4896_s24  ;;  %p379_p1 = scmp.ne.s32.totalorder %s4880_s20, %s4876_s19 }
  0x1a   : > { %5698 = sst [smem:[#allocation15_spill]] %s4900_s25  ;;  %p380_p2 = scmp.eq.s32.totalorder %s3629_s26, 3 }
  0x1b   : > { %s5735_s28 = smov (%p42_p0, %s41_s28), 0  ;;  %s5737_s29 = smov (!%p42_p0, %s44_s29), %s4896_s24 }
  0x1c   : > { %5699 = sst [smem:[#allocation16_spill]] %s5735_s28  ;;  %p5044_p3 = por %p380_p2, %p379_p1 }
  0x1d   : > { %p385_p4 = scmp.ne.s32.totalorder %s4876_s19, %s4872_s18  ;;  %p46_p5 = scmp.ge.s32.totalorder %s5737_s29, 2 }
  0x1e   : > { %s5700_s30 = scalar_select %p5044_p3, 1, 0 }
  0x1f   : > { %p386_p6 = scmp.eq.s32.totalorder %s3630_s27, 3  ;;  %p3633_p7 = scmp.ge.s32.totalorder %s4900_s25, 1 }
  0x20   : > { %5701 = sst [smem:[#allocation17_spill]] %s5700_s30  ;;  %p536_p8 = scmp.lt.s32.totalorder %s4900_s25, 5 }
  0x21   : > { %s5739_s29 = smov (%p46_p5, %s5737_s29), 0  ;;  %p5054_p9 = por %p386_p6, %p385_p4 }
  0x22   : > { %5702 = sst [smem:[#allocation18_spill]] %s5739_s29  ;;  %p537_p10 = pnand %p3633_p7, %p536_p8 }
  0x23   : > { %s5703_s16 = scalar_select %p5054_p9, 1, 0 }
  0x24   : > { %s366_s17 = ssub.s32 %s4896_s24, %s5739_s29  ;;  %s369_s26 = sadd.s32 1, %s4880_s20 }
  0x25   : > { %5704 = sst [smem:[#allocation19_spill]] %s5703_s16  ;;  %p367_p11 = scmp.eq.s32.totalorder %s366_s17, 0 }
  0x26   : > { %540 = sbr.rel (%p537_p10) target bundleno = 3418 (0xd5a), region = 72  ;;  %s5065_s27 = sand.u32 (!%p537_p10), 1, %s4876_s19  }
  0x27   : > { %s5062_s28 = scalar_select %p367_p11, %s4880_s20, %s369_s26  }
  0x28   : > { %p630_p12 = scmp.lt.s32.totalorder (!%p537_p10), %s4888_s22, 1  ;;  %s5706_s3 = sld [smem:[#allocation24_spill]] (!%p537_p10) }
  0x29   : > { %5705 = sst [smem:[#allocation20_spill]] %s5062_s28  ;;  %s3634_s29 = sshll.u32 (!%p537_p10), %s5065_s27, 3 }
  0x2a   : > { %p637_p13 = scmp.lt.s32.totalorder (!%p537_p10), %s4884_s21, 1  ;;  %s5708_s0 = sld [smem:[#allocation21_spill]] (!%p537_p10) }
  0x2b   : > { %s5709_s6 = sld [smem:[#allocation27_spill]] (!%p537_p10)  ;;  %s5710_s8 = sld [smem:[#allocation29_spill]] (!%p537_p10) }
  0x2c   : > { %s5711_s7 = sld [smem:[#allocation28_spill]] (!%p537_p10)  ;;  %s5712_s9 = sld [smem:[#allocation30_spill]] (!%p537_p10) }
  0x2d   : > { %s5076_s17 = scalar_select %p630_p12, %s4888_s22, 1 }
  0x2e   : > { %v5071_v0 = vld [vmem:[%s5706_s3] sm:$0xf]  ;;  %s638_s26 = scalar_select %p637_p13, %s4884_s21, 1 }
  0x2f   : > { %s3635_s24 = sshll.u32 %s5076_s17, 3  ;;  %s5128_s13 = scalar_lea.vmem [#allocation3], %s3634_s29 }
  0x30   : > { %s633_s15 = scalar_lea.vmem %s5708_s0, %s3635_s24  ;;  %s4495_s18 = smul.u32 768, %s638_s26 }
  0x31   : > { %s4496_s23 = smul.u32 12, %s638_s26  ;;  %s3968_s3 = sshll.u32 %s638_s26, 6 }
  0x32   : > { %s5090_s22 = scalar_lea.vmem %s5709_s6, %s4495_s18  ;;  %s5095_s2 = scalar_lea.vmem %s5710_s8, %s3968_s3 }
  0x33   : > { %s5100_s19 = scalar_lea.vmem %s5711_s7, %s4496_s23  ;;  %s3969_s24 = sshll.u32 %s638_s26, 7 }
  0x34   : > { %s5105_s0 = scalar_lea.vmem %s5712_s9, %s3969_s24  ;;  %s3641_s1 = sshll.u32 %s638_s26, 1 }
  0x35   : > { %s5110_s18 = scalar_lea.vmem %s5657_s10, %s3641_s1  ;;  %s5115_s5 = scalar_lea.vmem %s5658_s11, %s3969_s24 }
  0x36   : > { %s3644_s20 = sshll.u32 %s638_s26, 3  ;;  %s674_s23 = sadd.s32 %s3641_s1, %s5076_s17 }
  0x37   : > { %s5121_s7 = scalar_lea.vmem %s5659_s12, %s3644_s20  ;;  %s3646_s25 = sshll.u32 %s674_s23, 3 }
  0x38   : > { %s5126_s9 = scalar_lea.vmem %s5661_s14, %s3646_s25  ;;  %s629_s30 = scalar_lea.vmem [#allocation5], %s5065_s27 }
  0x39   : > { %p3647_p0 = scmp.ne.s32.totalorder %s4884_s21, 0 }
  0x3a   : > { %v683_v1 = vld [vmem:[%s633_s15] sm:$0xff] (!%p3647_p0)  ;;  %s5713_s24 = sld [smem:[#allocation23_spill]] (!%p3647_p0)  ;;  %v4902_v3 = vmov (!%p3647_p0), 0   ;;  %v4903_v4 = vmov (!%p3647_p0), 2   ;;  %v4904_v7 = vmov (!%p3647_p0), 0.0   ;;  %v4905_v10 = vmov (!%p3647_p0), 1  }
  0x3b   : > { %682 = sbr.rel (%p3647_p0) target bundleno = 731 (0x2db), region = 76  ;;  %4584 = vset.pattern.permute.xlu0 (!%p3647_p0), %v4902_v3  ;;  %4586 = vset.pattern.permute.xlu1 (!%p3647_p0), %v4903_v4  ;;  %v701_v5 = vadd.s32 (!%p3647_p0), 32, %v683_v1  ;;  %v693_v6 = vadd.s32 (!%p3647_p0), 16, %v683_v1  ;;  %v709_v8 = vadd.s32 (!%p3647_p0), 48, %v683_v1  ;;  %v4906_v11 = vmov (!%p3647_p0), 3   ;;  %s5715_s25 = sld [smem:[#allocation25_spill]] (!%p3647_p0) }
  0x3c   : > { %687 = vperm.xlu0 (!%p3647_p0), %4584, %v683_v1   ;;  %4143 = vmatprep.subr.bf16.mxu0 (!%p3647_p0), %v4904_v7  ;;  %vm4907_vm0 = vmmov (!%p3647_p0), 0   ;;  %v684_v14 = vlaneseq (!%p3647_p0)  ;;  %vm754_vm5 = vcmask (!%p3647_p0), 523264  }
  0x3d   : > { %703 = vperm.xlu1 (!%p3647_p0), %4586, %v701_v5   ;;  %4151 = vmatprep.mubr.msk.bf16.mxu0 (!%p3647_p0), %vm4907_vm0, %v4904_v7 }
  0x3e   : > { %v685_v15 = vand.u32 (!%p3647_p0), 127, %v684_v14  ;;  %v727_v28 = vshrl.u32 (!%p3647_p0), %v684_v14, 7 }
  0x40   : > { %s5714_s4 = smov (!%p3647_p0), %s5713_s24  ;;  %v4589_v2 = vld [vmem:[%s5713_s24] sm:$0xff] (!%p3647_p0)   ;;  %4585 = vset.pattern.permute.xlu0 (!%p3647_p0), %v4905_v10  ;;  %v728_v29 = vsub.s32 (!%p3647_p0), 0, %v727_v28  ;;  %v814_v45 = vsub.s32 (!%p3647_p0), 1, %v727_v28  ;;  %v819_v46 = vsub.s32 (!%p3647_p0), 2, %v727_v28 }
  0x41   : > { %4144 = vmatpush3.bf16.msra.mxu0 (!%p3647_p0), %v4589_v2  ;;  %v4590_v9 = vld [vmem:[%s5714_s4 + $0x8] sm:$0xff] (!%p3647_p0)   ;;  %695 = vperm.xlu0 (!%p3647_p0), %4585, %v693_v6   ;;  %v4591_v12 = vld [vmem:[%s5714_s4 + $0x10] sm:$0xff] (!%p3647_p0)   ;;  %v4592_v13 = vld [vmem:[%s5714_s4 + $0x18] sm:$0xff] (!%p3647_p0)  }
  0x42   : > { %4145 = vmatprep.subr.bf16.mxu0 %v4904_v7  ;;  %4587 = vset.pattern.permute.xlu1 %v4906_v11  ;;  %v729_v30 = vrot.slane %v5071_v0, %v728_v29  ;;  %v798_v32 = vld [vmem:[%s5715_s25] sm:$0xff]  ;;  %v815_v47 = vrot.slane %v5071_v0, %v814_v45  ;;  %v820_v49 = vrot.slane %v5071_v0, %v819_v46 }
  0x43   : > { %711 = vperm.xlu1 %4587, %v709_v8  }
  0x45   : > { %4146 = vmatpush3.bf16.msra.mxu0 %v4590_v9  ;;  %4588 = vset.pattern.permute.xlu0 %v4906_v11 }
  0x46   : > { %4147 = vmatprep.subr.bf16.mxu0 %v4904_v7 }
  0x49   : > { %4148 = vmatpush3.bf16.msra.mxu0 %v4591_v12 }
  0x4a   : > { %4149 = vmatprep.subr.bf16.mxu0 %v4904_v7 }
  0x4d   : > { %4150 = vmatpush3.bf16.msra.mxu0 %v4592_v13 }
  0xbb   : > { %v688_v16 = vpop.permute.xlu0 %687 }
  0xbc   : > { %v704_v17 = vpop.permute.xlu1 %703  ;;  %vm689_vm1 = vcmp.eq.s32.totalorder %v685_v15, %v688_v16 }
  0xbd   : > { %vm705_vm2 = vcmp.eq.s32.totalorder %v685_v15, %v704_v17  ;;  %v3648_v20 = vsel %vm689_vm1, 1.0, %v4904_v7 }
  0xbe   : > { %v3650_v23 = vsel %vm705_vm2, 1.0, %v4904_v7 }
  0xc0   : > { %v696_v18 = vpop.permute.xlu0 %695 }
  0xc1   : > { %vm697_vm3 = vcmp.eq.s32.totalorder %v685_v15, %v696_v18 }
  0xc2   : > { %v712_v19 = vpop.permute.xlu1 %711  ;;  %v3649_v21 = vsel %vm697_vm3, 1.0, %v4904_v7 }
  0xc3   : > { %vm713_vm4 = vcmp.eq.s32.totalorder %v685_v15, %v712_v19  ;;  %v700_v22 = vadd.f32 %v3649_v21, %v3648_v20 }
  0xc4   : > { %v3651_v24 = vsel %vm713_vm4, 1.0, %v4904_v7 }
  0xc5   : > { %v708_v25 = vadd.f32 %v3650_v23, %v700_v22 }
  0xc7   : > { %v716_v26 = vadd.f32 %v3651_v24, %v708_v25 }
  0xc9   : > { %v717_v27 = vpack.c.bf16 %v716_v26, %v716_v26 }
  0xcb   : > { %4152 = vmatmul.mubr.msk.bf16.vlgmr.msra.gmra.mrb[0].mxu0 %vm754_vm5, %v717_v27 }
 0x19e   : > { %v792_v31 = vpop.f32.mrb[0].mxu0 }
 0x19f   : > { %v793_v33 = vadd.f32 %v792_v31, %v729_v30  ;;  %v4153_v34 = vpop.f32.mrb[1].mxu0 }
 0x1a0   : > { %v795_v35 = vpop.f32.mrb[2].mxu0 }
 0x1a1   : > { %v4154_v36 = vpop.f32.mrb[3].mxu0  ;;  %v799_v37 = vadd.f32 %v798_v32, %v793_v33 }
 0x1a3   : > { %800 = vadd.xlane.f32.xlu1 %v799_v37 }
 0x230   : > { %v801_v38 = vpop.xlane.xlu1 %800 }
 0x231   : > { %v803_v39 = vmul.f32 0.0078125, %v801_v38 }
 0x233   : > { %v804_v40 = vsub.f32 %v799_v37, %v803_v39 }
 0x235   : > { %v805_v41 = vmul.f32 %v804_v40, %v804_v40 }
 0x237   : > { %806 = vadd.xlane.f32.xlu0 %v805_v41 }
 0x2c4   : > { %v807_v42 = vpop.xlane.xlu0 %806 }
 0x2c5   : > { %v808_v43 = vmul.f32 0.0078125, %v807_v42 }
 0x2c7   : > { %v809_v44 = vadd.f32 1e-12, %v808_v43 }
 0x2c9   : > { %4593 = vrsqrt.f32 %v809_v44 }
 0x2d3   : > { %v4594_v48 = vpop.eup %4593 }
 0x2d4   : > { %v811_v50 = vmul.f32 %v4594_v48, %v804_v40 }
 0x2d6   : > { %v816_v51 = vmul.f32 %v815_v47, %v811_v50 }
 0x2d8   : > { %v821_v52 = vadd.f32 %v820_v49, %v816_v51 }
 0x2da   : > { %822 = vst [vmem:[#allocation2] sm:$0xff] %v821_v52  ;;  %823 = vst [vmem:[%s5128_s13] sm:$0xff] %v821_v52 }
 0x2db PF: > { %v4595_v53 = vld [vmem:[%s5090_s22] sm:$0xff]   ;;  %v4908_v54 = vmov 0.0   ;;  %v4597_v56 = vld [vmem:[%s5090_s22 + $0x8] sm:$0xff]   ;;  %vm4909_vm6 = vmmov 0   ;;  %v4599_v58 = vld [vmem:[%s5090_s22 + $0x10] sm:$0xff]   ;;  %vm2170_vm7 = vcmask 261120  }
 0x2dc   : > { %4155 = vmatprep.subr.bf16.mxu0 %v4908_v54  ;;  %4175 = vmatprep.subr.bf16.mxu1 %v4908_v54  ;;  %v4596_v55 = vld [vmem:[%s5090_s22 + $0x40] sm:$0xff]   ;;  %v4598_v57 = vld [vmem:[%s5090_s22 + $0x48] sm:$0xff]   ;;  %v4600_v59 = vld [vmem:[%s5090_s22 + $0x50] sm:$0xff]   ;;  %vm2426_vm8 = vcmask 1043456   ;;  %s5716_s16 = sld [smem:[#allocation22_spill]]  ;;  %vm2370_vm9 = vcmask 64512  }
 0x2dd   : > { %4156 = vmatpush3.bf16.msra.mxu0 %v4595_v53  ;;  %4171 = vmatprep.mubr.msk.bf16.mxu0 %vm4909_vm6, %v4908_v54  ;;  %v4601_v60 = vld [vmem:[%s5090_s22 + $0x18] sm:$0xff]   ;;  %v4603_v62 = vld [vmem:[%s5090_s22 + $0x20] sm:$0xff]   ;;  %v4605_v1 = vld [vmem:[%s5090_s22 + $0x28] sm:$0xff]   ;;  %p3954_p1 = scmp.ne.s32.totalorder %s4884_s21, 1 }
 0x2de   : > { %4176 = vmatpush3.bf16.msra.mxu1 %v4596_v55  ;;  %4157 = vmatprep.subr.bf16.mxu0 %v4908_v54  ;;  %v4602_v61 = vld [vmem:[%s5090_s22 + $0x58] sm:$0xff]   ;;  %v4604_v63 = vld [vmem:[%s5090_s22 + $0x60] sm:$0xff]   ;;  %v4606_v2 = vld [vmem:[%s5090_s22 + $0x68] sm:$0xff]   ;;  %vm4912_vm10 = vmmov (!%p3954_p1), 0  }
 0x2df   : > { %4177 = vmatprep.subr.bf16.mxu1 %v4908_v54  ;;  %4191 = vmatprep.mubr.msk.bf16.mxu1 %vm4909_vm6, %v4908_v54  ;;  %v4607_v3 = vld [vmem:[%s5090_s22 + $0x30] sm:$0xff]   ;;  %v4609_v5 = vld [vmem:[%s5090_s22 + $0x38] sm:$0xff]   ;;  %v4611_v9 = vld [vmem:[%s5090_s22 + $0x80] sm:$0xff]  }
 0x2e0   : > { %v4608_v4 = vld [vmem:[%s5090_s22 + $0x70] sm:$0xff]   ;;  %v4610_v7 = vld [vmem:[%s5090_s22 + $0x78] sm:$0xff]   ;;  %v4612_v10 = vld [vmem:[%s5090_s22 + $0xc0] sm:$0xff]  }
 0x2e1   : > { %4158 = vmatpush3.bf16.msra.mxu0 %v4597_v56  ;;  %v824_v6 = vld [vmem:[#allocation2] sm:$0xff]  ;;  %v4613_v11 = vld [vmem:[%s5090_s22 + $0x88] sm:$0xff]   ;;  %v4615_v13 = vld [vmem:[%s5090_s22 + $0x90] sm:$0xff]  }
 0x2e2   : > { %4178 = vmatpush3.bf16.msra.mxu1 %v4598_v57  ;;  %4159 = vmatprep.subr.bf16.mxu0 %v4908_v54  ;;  %v5187_v8 = vpack.c.bf16 %v824_v6, %v824_v6  ;;  %v4614_v12 = vld [vmem:[%s5090_s22 + $0xc8] sm:$0xff]   ;;  %v4616_v14 = vld [vmem:[%s5090_s22 + $0xd0] sm:$0xff]   ;;  %v4617_v15 = vld [vmem:[%s5090_s22 + $0x98] sm:$0xff]   ;;  %s5717_s26 = scalar_lea.vmem %s5716_s16, %s5076_s17 }
 0x2e3   : > { %4179 = vmatprep.subr.bf16.mxu1 %v4908_v54  ;;  %v4618_v16 = vld [vmem:[%s5090_s22 + $0xd8] sm:$0xff]   ;;  %v4619_v17 = vld [vmem:[%s5090_s22 + $0xa0] sm:$0xff]   ;;  %v4621_v19 = vld [vmem:[%s5090_s22 + $0xa8] sm:$0xff]  }
 0x2e4   : > { %v4620_v18 = vld [vmem:[%s5090_s22 + $0xe0] sm:$0xff]   ;;  %v4622_v20 = vld [vmem:[%s5090_s22 + $0xe8] sm:$0xff]   ;;  %v4623_v21 = vld [vmem:[%s5090_s22 + $0xb0] sm:$0xff]  }
 0x2e5   : > { %4160 = vmatpush3.bf16.msra.mxu0 %v4599_v58  ;;  %v4624_v22 = vld [vmem:[%s5090_s22 + $0xf0] sm:$0xff]   ;;  %v4625_v23 = vld [vmem:[%s5090_s22 + $0xb8] sm:$0xff]   ;;  %v4627_v25 = vld [vmem:[%s5090_s22 + $0x100] sm:$0xff]  }
 0x2e6   : > { %4180 = vmatpush3.bf16.msra.mxu1 %v4600_v59  ;;  %4161 = vmatprep.subr.bf16.mxu0 %v4908_v54  ;;  %v4626_v24 = vld [vmem:[%s5090_s22 + $0xf8] sm:$0xff]   ;;  %v4628_v26 = vld [vmem:[%s5090_s22 + $0x140] sm:$0xff]   ;;  %v4629_v27 = vld [vmem:[%s5090_s22 + $0x108] sm:$0xff]  }
 0x2e7   : > { %4181 = vmatprep.subr.bf16.mxu1 %v4908_v54  ;;  %v4630_v28 = vld [vmem:[%s5090_s22 + $0x148] sm:$0xff]   ;;  %v4631_v29 = vld [vmem:[%s5090_s22 + $0x110] sm:$0xff]   ;;  %v4633_v31 = vld [vmem:[%s5090_s22 + $0x118] sm:$0xff]  }
 0x2e8   : > { %v4632_v30 = vld [vmem:[%s5090_s22 + $0x150] sm:$0xff]   ;;  %v4634_v32 = vld [vmem:[%s5090_s22 + $0x158] sm:$0xff]   ;;  %v4635_v33 = vld [vmem:[%s5090_s22 + $0x120] sm:$0xff]  }
 0x2e9   : > { %4162 = vmatpush3.bf16.msra.mxu0 %v4601_v60  ;;  %v4636_v34 = vld [vmem:[%s5090_s22 + $0x160] sm:$0xff]   ;;  %v4637_v35 = vld [vmem:[%s5090_s22 + $0x128] sm:$0xff]   ;;  %v4639_v37 = vld [vmem:[%s5090_s22 + $0x130] sm:$0xff]  }
 0x2ea   : > { %4182 = vmatpush3.bf16.msra.mxu1 %v4602_v61  ;;  %4163 = vmatprep.subr.bf16.mxu0 %v4908_v54  ;;  %v4638_v36 = vld [vmem:[%s5090_s22 + $0x168] sm:$0xff]   ;;  %v4640_v38 = vld [vmem:[%s5090_s22 + $0x170] sm:$0xff]   ;;  %v4641_v39 = vld [vmem:[%s5090_s22 + $0x138] sm:$0xff]  }
 0x2eb   : > { %4183 = vmatprep.subr.bf16.mxu1 %v4908_v54  ;;  %v4642_v40 = vld [vmem:[%s5090_s22 + $0x178] sm:$0xff]   ;;  %v4643_v41 = vld [vmem:[%s5090_s22 + $0x180] sm:$0xff]   ;;  %v4645_v43 = vld [vmem:[%s5090_s22 + $0x188] sm:$0xff]  }
 0x2ec   : > { %v4644_v42 = vld [vmem:[%s5090_s22 + $0x1c0] sm:$0xff]   ;;  %v4646_v44 = vld [vmem:[%s5090_s22 + $0x1c8] sm:$0xff]   ;;  %v4647_v45 = vld [vmem:[%s5090_s22 + $0x190] sm:$0xff]  }
 0x2ed   : > { %4164 = vmatpush3.bf16.msra.mxu0 %v4603_v62  ;;  %v4648_v46 = vld [vmem:[%s5090_s22 + $0x1d0] sm:$0xff]   ;;  %v4649_v47 = vld [vmem:[%s5090_s22 + $0x198] sm:$0xff]   ;;  %v4651_v49 = vld [vmem:[%s5090_s22 + $0x1a0] sm:$0xff]  }
 0x2ee   : > { %4184 = vmatpush3.bf16.msra.mxu1 %v4604_v63  ;;  %4165 = vmatprep.subr.bf16.mxu0 %v4908_v54  ;;  %v4650_v48 = vld [vmem:[%s5090_s22 + $0x1d8] sm:$0xff]   ;;  %v4652_v50 = vld [vmem:[%s5090_s22 + $0x1e0] sm:$0xff]   ;;  %v4653_v51 = vld [vmem:[%s5090_s22 + $0x1a8] sm:$0xff]  }
 0x2ef   : > { %4185 = vmatprep.subr.bf16.mxu1 %v4908_v54  ;;  %v4654_v52 = vld [vmem:[%s5090_s22 + $0x1e8] sm:$0xff]   ;;  %v4655_v53 = vld [vmem:[%s5090_s22 + $0x1b0] sm:$0xff]   ;;  %v4657_v56 = vld [vmem:[%s5090_s22 + $0x1b8] sm:$0xff]  }
 0x2f0   : > { %v4656_v55 = vld [vmem:[%s5090_s22 + $0x1f0] sm:$0xff]   ;;  %v4658_v57 = vld [vmem:[%s5090_s22 + $0x1f8] sm:$0xff]   ;;  %v4659_v58 = vld [vmem:[%s5090_s22 + $0x200] sm:$0xff]  }
 0x2f1   : > { %4166 = vmatpush3.bf16.msra.mxu0 %v4605_v1  ;;  %v4660_v59 = vld [vmem:[%s5090_s22 + $0x240] sm:$0xff]   ;;  %v4661_v60 = vld [vmem:[%s5090_s22 + $0x208] sm:$0xff]   ;;  %v4663_v62 = vld [vmem:[%s5090_s22 + $0x210] sm:$0xff]  }
 0x2f2   : > { %4186 = vmatpush3.bf16.msra.mxu1 %v4606_v2  ;;  %4167 = vmatprep.subr.bf16.mxu0 %v4908_v54  ;;  %v4662_v61 = vld [vmem:[%s5090_s22 + $0x248] sm:$0xff]   ;;  %v4664_v63 = vld [vmem:[%s5090_s22 + $0x250] sm:$0xff]   ;;  %v4665_v1 = vld [vmem:[%s5090_s22 + $0x218] sm:$0xff]  }
 0x2f3   : > { %4187 = vmatprep.subr.bf16.mxu1 %v4908_v54  ;;  %v4666_v2 = vld [vmem:[%s5090_s22 + $0x258] sm:$0xff]   ;;  %v4670_v6 = vld [vmem:[%s5090_s22 + $0x268] sm:$0xff]  }
 0x2f5   : > { %4168 = vmatpush3.bf16.msra.mxu0 %v4607_v3  ;;  %v4667_v3 = vld [vmem:[%s5090_s22 + $0x220] sm:$0xff]  }
 0x2f6   : > { %4188 = vmatpush3.bf16.msra.mxu1 %v4608_v4  ;;  %4169 = vmatprep.subr.bf16.mxu0 %v4908_v54  ;;  %v4668_v4 = vld [vmem:[%s5090_s22 + $0x260] sm:$0xff]  }
 0x2f7   : > { %4189 = vmatprep.subr.bf16.mxu1 %v4908_v54 }
 0x2f9   : > { %4170 = vmatpush3.bf16.msra.mxu0 %v4609_v5  ;;  %v4669_v5 = vld [vmem:[%s5090_s22 + $0x228] sm:$0xff]  }
 0x2fa   : > { %4190 = vmatpush3.bf16.msra.mxu1 %v4610_v7  ;;  %4195 = vmatprep.subr.bf16.mxu0 %v4908_v54  ;;  %v4671_v7 = vld [vmem:[%s5090_s22 + $0x230] sm:$0xff]  }
 0x2fb   : > { %4215 = vmatprep.subr.bf16.mxu1 %v4908_v54 }
 0x2fc   : > { %4172 = vmatmul.mubr.bf16.vlgmr.msra.gmra.mrb[0].mxu0 %v5187_v8 }
 0x2fd   : > { %4192 = vmatmul.mubr.bf16.vlgmr.msra.gmra.mrb[0].mxu1 %v5187_v8  ;;  %4196 = vmatpush3.bf16.msra.mxu0 %v4611_v9  ;;  %v4672_v9 = vld [vmem:[%s5090_s22 + $0x270] sm:$0xff]  }
 0x2fe   : > { %4216 = vmatpush3.bf16.msra.mxu1 %v4612_v10  ;;  %4197 = vmatprep.subr.bf16.mxu0 %v4908_v54  ;;  %v4673_v10 = vld [vmem:[%s5090_s22 + $0x238] sm:$0xff]  }
 0x2ff   : > { %4217 = vmatprep.subr.bf16.mxu1 %v4908_v54  ;;  %4211 = vmatprep.mubr.msk.bf16.mxu0 %vm4909_vm6, %v4908_v54 }
 0x300   : > { %4231 = vmatprep.mubr.msk.bf16.mxu1 %vm4909_vm6, %v4908_v54 }
 0x301   : > { %4198 = vmatpush3.bf16.msra.mxu0 %v4613_v11  ;;  %v4674_v11 = vld [vmem:[%s5090_s22 + $0x278] sm:$0xff]  }
 0x302   : > { %4218 = vmatpush3.bf16.msra.mxu1 %v4614_v12  ;;  %4199 = vmatprep.subr.bf16.mxu0 %v4908_v54  ;;  %v4675_v12 = vld [vmem:[%s5090_s22 + $0x280] sm:$0xff]  }
 0x303   : > { %4219 = vmatprep.subr.bf16.mxu1 %v4908_v54 }
 0x305   : > { %4200 = vmatpush3.bf16.msra.mxu0 %v4615_v13  ;;  %v4676_v13 = vld [vmem:[%s5090_s22 + $0x2c0] sm:$0xff]  }
 0x306   : > { %4220 = vmatpush3.bf16.msra.mxu1 %v4616_v14  ;;  %4201 = vmatprep.subr.bf16.mxu0 %v4908_v54  ;;  %v4677_v14 = vld [vmem:[%s5090_s22 + $0x288] sm:$0xff]  }
 0x307   : > { %4221 = vmatprep.subr.bf16.mxu1 %v4908_v54 }
 0x309   : > { %4202 = vmatpush3.bf16.msra.mxu0 %v4617_v15  ;;  %v4678_v15 = vld [vmem:[%s5090_s22 + $0x2c8] sm:$0xff]  }
 0x30a   : > { %4222 = vmatpush3.bf16.msra.mxu1 %v4618_v16  ;;  %4203 = vmatprep.subr.bf16.mxu0 %v4908_v54  ;;  %v4679_v16 = vld [vmem:[%s5090_s22 + $0x290] sm:$0xff]  }
 0x30b   : > { %4223 = vmatprep.subr.bf16.mxu1 %v4908_v54 }
 0x30d   : > { %4204 = vmatpush3.bf16.msra.mxu0 %v4619_v17  ;;  %v4680_v17 = vld [vmem:[%s5090_s22 + $0x2d0] sm:$0xff]  }
 0x30e   : > { %4224 = vmatpush3.bf16.msra.mxu1 %v4620_v18  ;;  %4205 = vmatprep.subr.bf16.mxu0 %v4908_v54  ;;  %v4681_v18 = vld [vmem:[%s5090_s22 + $0x298] sm:$0xff]  }
 0x30f   : > { %4225 = vmatprep.subr.bf16.mxu1 %v4908_v54 }
 0x311   : > { %4206 = vmatpush3.bf16.msra.mxu0 %v4621_v19  ;;  %v4682_v19 = vld [vmem:[%s5090_s22 + $0x2d8] sm:$0xff]  }
 0x312   : > { %4226 = vmatpush3.bf16.msra.mxu1 %v4622_v20  ;;  %4207 = vmatprep.subr.bf16.mxu0 %v4908_v54  ;;  %v4683_v20 = vld [vmem:[%s5090_s22 + $0x2a0] sm:$0xff]  }
 0x313   : > { %4227 = vmatprep.subr.bf16.mxu1 %v4908_v54 }
 0x315   : > { %4208 = vmatpush3.bf16.msra.mxu0 %v4623_v21  ;;  %v4684_v21 = vld [vmem:[%s5090_s22 + $0x2e0] sm:$0xff]  }
 0x316   : > { %4228 = vmatpush3.bf16.msra.mxu1 %v4624_v22  ;;  %4209 = vmatprep.subr.bf16.mxu0 %v4908_v54  ;;  %v4685_v22 = vld [vmem:[%s5090_s22 + $0x2a8] sm:$0xff]  }
 0x317   : > { %4229 = vmatprep.subr.bf16.mxu1 %v4908_v54 }
 0x319   : > { %4210 = vmatpush3.bf16.msra.mxu0 %v4625_v23  ;;  %v4686_v23 = vld [vmem:[%s5090_s22 + $0x2e8] sm:$0xff]  }
 0x31a   : > { %4230 = vmatpush3.bf16.msra.mxu1 %v4626_v24  ;;  %4235 = vmatprep.subr.bf16.mxu0 %v4908_v54  ;;  %v4687_v24 = vld [vmem:[%s5090_s22 + $0x2b0] sm:$0xff]  }
 0x31b   : > { %4255 = vmatprep.subr.bf16.mxu1 %v4908_v54 }
 0x31c   : > { %4212 = vmatmul.mubr.bf16.vlgmr.msra.gmra.mrb[4].mxu0 %v5187_v8 }
 0x31d   : > { %4232 = vmatmul.mubr.bf16.vlgmr.msra.gmra.mrb[4].mxu1 %v5187_v8  ;;  %4236 = vmatpush3.bf16.msra.mxu0 %v4627_v25  ;;  %v4688_v25 = vld [vmem:[%s5090_s22 + $0x2f0] sm:$0xff]  }
 0x31e   : > { %4256 = vmatpush3.bf16.msra.mxu1 %v4628_v26  ;;  %4237 = vmatprep.subr.bf16.mxu0 %v4908_v54  ;;  %v4689_v26 = vld [vmem:[%s5090_s22 + $0x2b8] sm:$0xff]  }
 0x31f   : > { %4257 = vmatprep.subr.bf16.mxu1 %v4908_v54  ;;  %4251 = vmatprep.mubr.msk.bf16.mxu0 %vm4909_vm6, %v4908_v54 }
 0x320   : > { %4271 = vmatprep.mubr.msk.bf16.mxu1 %vm4909_vm6, %v4908_v54 }
 0x321   : > { %4238 = vmatpush3.bf16.msra.mxu0 %v4629_v27  ;;  %v4690_v27 = vld [vmem:[%s5090_s22 + $0x2f8] sm:$0xff]  }
 0x322   : > { %4258 = vmatpush3.bf16.msra.mxu1 %v4630_v28  ;;  %4239 = vmatprep.subr.bf16.mxu0 %v4908_v54 }
 0x323   : > { %4259 = vmatprep.subr.bf16.mxu1 %v4908_v54 }
 0x325   : > { %4240 = vmatpush3.bf16.msra.mxu0 %v4631_v29 }
 0x326   : > { %4260 = vmatpush3.bf16.msra.mxu1 %v4632_v30  ;;  %4241 = vmatprep.subr.bf16.mxu0 %v4908_v54 }
 0x327   : > { %4261 = vmatprep.subr.bf16.mxu1 %v4908_v54 }
 0x329   : > { %4242 = vmatpush3.bf16.msra.mxu0 %v4633_v31 }
 0x32a   : > { %4262 = vmatpush3.bf16.msra.mxu1 %v4634_v32  ;;  %4243 = vmatprep.subr.bf16.mxu0 %v4908_v54 }
 0x32b   : > { %4263 = vmatprep.subr.bf16.mxu1 %v4908_v54 }
 0x32d   : > { %4244 = vmatpush3.bf16.msra.mxu0 %v4635_v33 }
 0x32e   : > { %4264 = vmatpush3.bf16.msra.mxu1 %v4636_v34  ;;  %4245 = vmatprep.subr.bf16.mxu0 %v4908_v54 }
 0x32f   : > { %4265 = vmatprep.subr.bf16.mxu1 %v4908_v54 }
 0x331   : > { %4246 = vmatpush3.bf16.msra.mxu0 %v4637_v35 }
 0x332   : > { %4266 = vmatpush3.bf16.msra.mxu1 %v4638_v36  ;;  %4247 = vmatprep.subr.bf16.mxu0 %v4908_v54 }
 0x333   : > { %4267 = vmatprep.subr.bf16.mxu1 %v4908_v54 }
 0x335   : > { %4248 = vmatpush3.bf16.msra.mxu0 %v4639_v37 }
 0x336   : > { %4268 = vmatpush3.bf16.msra.mxu1 %v4640_v38  ;;  %4249 = vmatprep.subr.bf16.mxu0 %v4908_v54 }
 0x337   : > { %4269 = vmatprep.subr.bf16.mxu1 %v4908_v54 }
 0x339   : > { %4250 = vmatpush3.bf16.msra.mxu0 %v4641_v39 }
 0x33a   : > { %4270 = vmatpush3.bf16.msra.mxu1 %v4642_v40  ;;  %4275 = vmatprep.subr.bf16.mxu0 %v4908_v54 }
 0x33b   : > { %4295 = vmatprep.subr.bf16.mxu1 %v4908_v54 }
 0x33c   : > { %4252 = vmatmul.mubr.bf16.vlgmr.msra.gmra.mrb[8].mxu0 %v5187_v8 }
 0x33d   : > { %4272 = vmatmul.mubr.bf16.vlgmr.msra.gmra.mrb[8].mxu1 %v5187_v8  ;;  %4276 = vmatpush3.bf16.msra.mxu0 %v4643_v41 }
 0x33e   : > { %4296 = vmatpush3.bf16.msra.mxu1 %v4644_v42  ;;  %4277 = vmatprep.subr.bf16.mxu0 %v4908_v54 }
 0x33f   : > { %4297 = vmatprep.subr.bf16.mxu1 %v4908_v54  ;;  %4291 = vmatprep.mubr.msk.bf16.mxu0 %vm4909_vm6, %v4908_v54 }
 0x340   : > { %4311 = vmatprep.mubr.msk.bf16.mxu1 %vm4909_vm6, %v4908_v54 }
 0x341   : > { %4278 = vmatpush3.bf16.msra.mxu0 %v4645_v43  ;;  %v3761_v43 = vld [vmem:[%s5100_s19 + $0x4] ss:$0 sm:$0xff] }
 0x342   : > { %4298 = vmatpush3.bf16.msra.mxu1 %v4646_v44  ;;  %4279 = vmatprep.subr.bf16.mxu0 %v4908_v54  ;;  %v3762_v44 = vld [vmem:[%s5100_s19 + $0x5] ss:$0 sm:$0xff] }
 0x343   : > { %4299 = vmatprep.subr.bf16.mxu1 %v4908_v54 }
 0x345   : > { %4280 = vmatpush3.bf16.msra.mxu0 %v4647_v45 }
 0x346   : > { %4300 = vmatpush3.bf16.msra.mxu1 %v4648_v46  ;;  %4281 = vmatprep.subr.bf16.mxu0 %v4908_v54 }
 0x347   : > { %4301 = vmatprep.subr.bf16.mxu1 %v4908_v54 }
 0x349   : > { %4282 = vmatpush3.bf16.msra.mxu0 %v4649_v47 }
 0x34a   : > { %4302 = vmatpush3.bf16.msra.mxu1 %v4650_v48  ;;  %4283 = vmatprep.subr.bf16.mxu0 %v4908_v54 }
 0x34b   : > { %4303 = vmatprep.subr.bf16.mxu1 %v4908_v54 }
 0x34d   : > { %4284 = vmatpush3.bf16.msra.mxu0 %v4651_v49 }
 0x34e   : > { %4304 = vmatpush3.bf16.msra.mxu1 %v4652_v50  ;;  %4285 = vmatprep.subr.bf16.mxu0 %v4908_v54 }
 0x34f   : > { %4305 = vmatprep.subr.bf16.mxu1 %v4908_v54 }
 0x351   : > { %4286 = vmatpush3.bf16.msra.mxu0 %v4653_v51 }
 0x352   : > { %4306 = vmatpush3.bf16.msra.mxu1 %v4654_v52  ;;  %4287 = vmatprep.subr.bf16.mxu0 %v4908_v54 }
 0x353   : > { %4307 = vmatprep.subr.bf16.mxu1 %v4908_v54 }
 0x355   : > { %4288 = vmatpush3.bf16.msra.mxu0 %v4655_v53 }
 0x356   : > { %4308 = vmatpush3.bf16.msra.mxu1 %v4656_v55  ;;  %4289 = vmatprep.subr.bf16.mxu0 %v4908_v54 }
 0x357   : > { %4309 = vmatprep.subr.bf16.mxu1 %v4908_v54 }
 0x359   : > { %4290 = vmatpush3.bf16.msra.mxu0 %v4657_v56  ;;  %v3657_v56 = vld [vmem:[%s5100_s19] ss:$0 sm:$0xff] }
 0x35a   : > { %4310 = vmatpush3.bf16.msra.mxu1 %v4658_v57  ;;  %4315 = vmatprep.subr.bf16.mxu0 %v4908_v54 }
 0x35b   : > { %4335 = vmatprep.subr.bf16.mxu1 %v4908_v54 }
 0x35c   : > { %4292 = vmatmul.mubr.bf16.vlgmr.msra.gmra.mrb[12].mxu0 %v5187_v8 }
 0x35d   : > { %4312 = vmatmul.mubr.bf16.vlgmr.msra.gmra.mrb[12].mxu1 %v5187_v8  ;;  %4316 = vmatpush3.bf16.msra.mxu0 %v4659_v58 }
 0x35e   : > { %4336 = vmatpush3.bf16.msra.mxu1 %v4660_v59  ;;  %4317 = vmatprep.subr.bf16.mxu0 %v4908_v54  ;;  %v3658_v59 = vld [vmem:[%s5100_s19 + $0x1] ss:$0 sm:$0xff] }
 0x35f   : > { %4337 = vmatprep.subr.bf16.mxu1 %v4908_v54  ;;  %4331 = vmatprep.mubr.msk.bf16.mxu0 %vm4909_vm6, %v4908_v54 }
 0x360   : > { %4351 = vmatprep.mubr.msk.bf16.mxu1 %vm4909_vm6, %v4908_v54 }
 0x361   : > { %4318 = vmatpush3.bf16.msra.mxu0 %v4661_v60 }
 0x362   : > { %4338 = vmatpush3.bf16.msra.mxu1 %v4662_v61  ;;  %4319 = vmatprep.subr.bf16.mxu0 %v4908_v54 }
 0x363   : > { %4339 = vmatprep.subr.bf16.mxu1 %v4908_v54 }
 0x365   : > { %4320 = vmatpush3.bf16.msra.mxu0 %v4663_v62 }
 0x366   : > { %4340 = vmatpush3.bf16.msra.mxu1 %v4664_v63  ;;  %4321 = vmatprep.subr.bf16.mxu0 %v4908_v54 }
 0x367   : > { %4341 = vmatprep.subr.bf16.mxu1 %v4908_v54 }
 0x369   : > { %4322 = vmatpush3.bf16.msra.mxu0 %v4665_v1 }
 0x36a   : > { %4342 = vmatpush3.bf16.msra.mxu1 %v4666_v2  ;;  %4323 = vmatprep.subr.bf16.mxu0 %v4908_v54 }
 0x36b   : > { %4343 = vmatprep.subr.bf16.mxu1 %v4908_v54 }
 0x36d   : > { %4324 = vmatpush3.bf16.msra.mxu0 %v4667_v3  ;;  %v3763_v3 = vld [vmem:[%s5100_s19 + $0x6] ss:$0 sm:$0xff] }
 0x36e   : > { %4344 = vmatpush3.bf16.msra.mxu1 %v4668_v4  ;;  %4325 = vmatprep.subr.bf16.mxu0 %v4908_v54  ;;  %v3764_v4 = vld [vmem:[%s5100_s19 + $0x7] ss:$0 sm:$0xff] }
 0x36f   : > { %4345 = vmatprep.subr.bf16.mxu1 %v4908_v54 }
 0x371   : > { %4326 = vmatpush3.bf16.msra.mxu0 %v4669_v5 }
 0x372   : > { %4346 = vmatpush3.bf16.msra.mxu1 %v4670_v6  ;;  %4327 = vmatprep.subr.bf16.mxu0 %v4908_v54 }
 0x373   : > { %4347 = vmatprep.subr.bf16.mxu1 %v4908_v54 }
 0x375   : > { %4328 = vmatpush3.bf16.msra.mxu0 %v4671_v7 }
 0x376   : > { %4348 = vmatpush3.bf16.msra.mxu1 %v4672_v9  ;;  %4329 = vmatprep.subr.bf16.mxu0 %v4908_v54 }
 0x377   : > { %4349 = vmatprep.subr.bf16.mxu1 %v4908_v54 }
 0x379   : > { %4330 = vmatpush3.bf16.msra.mxu0 %v4673_v10 }
 0x37a   : > { %4350 = vmatpush3.bf16.msra.mxu1 %v4674_v11  ;;  %4355 = vmatprep.subr.bf16.mxu0 %v4908_v54 }
 0x37b   : > { %4375 = vmatprep.subr.bf16.mxu1 %v4908_v54 }
 0x37c   : > { %4332 = vmatmul.mubr.bf16.vlgmr.msra.gmra.mrb[16].mxu0 %v5187_v8 }
 0x37d   : > { %4352 = vmatmul.mubr.bf16.vlgmr.msra.gmra.mrb[16].mxu1 %v5187_v8  ;;  %4356 = vmatpush3.bf16.msra.mxu0 %v4675_v12 }
 0x37e   : > { %4376 = vmatpush3.bf16.msra.mxu1 %v4676_v13  ;;  %4357 = vmatprep.subr.bf16.mxu0 %v4908_v54 }
 0x37f   : > { %4377 = vmatprep.subr.bf16.mxu1 %v4908_v54  ;;  %4371 = vmatprep.mubr.msk.bf16.mxu0 %vm4909_vm6, %v4908_v54 }
 0x380   : > { %4391 = vmatprep.mubr.msk.bf16.mxu1 %vm4909_vm6, %v4908_v54 }
 0x381   : > { %4358 = vmatpush3.bf16.msra.mxu0 %v4677_v14 }
 0x382   : > { %4378 = vmatpush3.bf16.msra.mxu1 %v4678_v15  ;;  %4359 = vmatprep.subr.bf16.mxu0 %v4908_v54 }
 0x383   : > { %4379 = vmatprep.subr.bf16.mxu1 %v4908_v54 }
 0x385   : > { %4360 = vmatpush3.bf16.msra.mxu0 %v4679_v16  ;;  %v3659_v16 = vld [vmem:[%s5100_s19 + $0x2] ss:$0 sm:$0xff] }
 0x386   : > { %4380 = vmatpush3.bf16.msra.mxu1 %v4680_v17  ;;  %4361 = vmatprep.subr.bf16.mxu0 %v4908_v54 }
 0x387   : > { %4381 = vmatprep.subr.bf16.mxu1 %v4908_v54 }
 0x389   : > { %4362 = vmatpush3.bf16.msra.mxu0 %v4681_v18 }
 0x38a   : > { %4382 = vmatpush3.bf16.msra.mxu1 %v4682_v19  ;;  %4363 = vmatprep.subr.bf16.mxu0 %v4908_v54  ;;  %v3660_v19 = vld [vmem:[%s5100_s19 + $0x3] ss:$0 sm:$0xff] }
 0x38b   : > { %4383 = vmatprep.subr.bf16.mxu1 %v4908_v54 }
 0x38d   : > { %4364 = vmatpush3.bf16.msra.mxu0 %v4683_v20 }
 0x38e   : > { %4384 = vmatpush3.bf16.msra.mxu1 %v4684_v21  ;;  %4365 = vmatprep.subr.bf16.mxu0 %v4908_v54 }
 0x38f   : > { %4385 = vmatprep.subr.bf16.mxu1 %v4908_v54 }
 0x391   : > { %4366 = vmatpush3.bf16.msra.mxu0 %v4685_v22 }
 0x392   : > { %4386 = vmatpush3.bf16.msra.mxu1 %v4686_v23  ;;  %4367 = vmatprep.subr.bf16.mxu0 %v4908_v54 }
 0x393   : > { %4387 = vmatprep.subr.bf16.mxu1 %v4908_v54 }
 0x395   : > { %4368 = vmatpush3.bf16.msra.mxu0 %v4687_v24 }
 0x396   : > { %4388 = vmatpush3.bf16.msra.mxu1 %v4688_v25  ;;  %4369 = vmatprep.subr.bf16.mxu0 %v4908_v54 }
 0x397   : > { %4389 = vmatprep.subr.bf16.mxu1 %v4908_v54 }
 0x399   : > { %4370 = vmatpush3.bf16.msra.mxu0 %v4689_v26  ;;  %v3865_v26 = vld [vmem:[%s5100_s19 + $0x8] ss:$0 sm:$0xff] }
 0x39a   : > { %4390 = vmatpush3.bf16.msra.mxu1 %v4690_v27  ;;  %4395 = vmatprep.subr.bf16.mxu0 %v4908_v54  ;;  %v3866_v27 = vld [vmem:[%s5100_s19 + $0x9] ss:$0 sm:$0xff] }
 0x39b   : > { %4401 = vmatprep.subr.bf16.mxu1 %v4908_v54 }
 0x39c   : > { %4372 = vmatmul.mubr.bf16.vlgmr.msra.gmra.mrb[20].mxu0 %v5187_v8 }
 0x39d   : > { %4392 = vmatmul.mubr.bf16.vlgmr.msra.gmra.mrb[20].mxu1 %v5187_v8  ;;  %4397 = vmatprep.mubr.msk.bf16.mxu0 %vm4909_vm6, %v4908_v54 }
 0x39e   : > { %4403 = vmatprep.mubr.msk.bf16.mxu1 %vm4909_vm6, %v4908_v54 }
 0x3cf   : > { %v1000_v28 = vpop.f32.mrb[0].mxu0 }
 0x3d0   : > { %v4173_v29 = vpop.f32.mrb[1].mxu0  ;;  %v1088_v30 = vpop.f32.mrb[0].mxu1  ;;  %v1001_v62 = vadd.f32 %v3657_v56, %v1000_v28 }
 0x3d1   : > { %v1003_v31 = vpop.f32.mrb[2].mxu0  ;;  %v4193_v32 = vpop.f32.mrb[1].mxu1  ;;  %v1089_v63 = vadd.f32 %v3658_v59, %v1088_v30  ;;  %v3905_v59 = vld [vmem:[%s5717_s26] ss:$0 sm:$0xff] }
 0x3d2   : > { %v4174_v33 = vpop.f32.mrb[3].mxu0  ;;  %v1091_v34 = vpop.f32.mrb[2].mxu1  ;;  %v2162_v1 = vpack.c.bf16 %v1001_v62, %v1001_v62 }
 0x3d3   : > { %v4194_v35 = vpop.f32.mrb[3].mxu1  ;;  %v2163_v2 = vpack.c.bf16 %v1089_v63, %v1089_v63 }
 0x3ef   : > { %v1176_v36 = vpop.f32.mrb[4].mxu0 }
 0x3f0   : > { %v4213_v37 = vpop.f32.mrb[5].mxu0  ;;  %v1264_v38 = vpop.f32.mrb[4].mxu1  ;;  %v1177_v22 = vadd.f32 %v3659_v16, %v1176_v36 }
 0x3f1   : > { %v1179_v8 = vpop.f32.mrb[6].mxu0  ;;  %v4233_v39 = vpop.f32.mrb[5].mxu1  ;;  %v1265_v23 = vadd.f32 %v3660_v19, %v1264_v38 }
 0x3f2   : > { %v4214_v40 = vpop.f32.mrb[7].mxu0  ;;  %v1267_v41 = vpop.f32.mrb[6].mxu1  ;;  %v2164_v24 = vpack.c.bf16 %v1177_v22, %v1177_v22 }
 0x3f3   : > { %v4234_v42 = vpop.f32.mrb[7].mxu1  ;;  %v2165_v25 = vpack.c.bf16 %v1265_v23, %v1265_v23  ;;  %v3867_v41 = vld [vmem:[%s5100_s19 + $0xa] ss:$0 sm:$0xff] }
 0x3f4   : > { %v3868_v42 = vld [vmem:[%s5100_s19 + $0xb] ss:$0 sm:$0xff] }
 0x40f   : > { %v1446_v45 = vpop.f32.mrb[8].mxu0 }
 0x410   : > { %v1447_v46 = vadd.f32 %v3761_v43, %v1446_v45  ;;  %v1534_v47 = vpop.f32.mrb[8].mxu1  ;;  %v4253_v48 = vpop.f32.mrb[9].mxu0 }
 0x411   : > { %v1535_v49 = vadd.f32 %v3762_v44, %v1534_v47  ;;  %v1449_v50 = vpop.f32.mrb[10].mxu0  ;;  %v4273_v51 = vpop.f32.mrb[9].mxu1 }
 0x412   : > { %v2166_v52 = vpack.c.bf16 %v1447_v46, %v1447_v46  ;;  %v4254_v53 = vpop.f32.mrb[11].mxu0  ;;  %v1537_v55 = vpop.f32.mrb[10].mxu1 }
 0x413   : > { %v2167_v57 = vpack.c.bf16 %v1535_v49, %v1535_v49  ;;  %v4274_v58 = vpop.f32.mrb[11].mxu1 }
 0x414   : > { %v2175_v60 = vsel %vm2170_vm7, %v2166_v52, 0 }
 0x415   : > { %v2221_v61 = vsel %vm2170_vm7, %v2167_v57, 0  ;;  %4396 = vmatpush3.bf16.xpose.msra.mxu0 %v2175_v60 }
 0x416   : > { %4402 = vmatpush3.bf16.xpose.msra.mxu1 %v2221_v61  ;;  %4407 = vmatprep.subr.bf16.mxu0 %v4908_v54 }
 0x417   : > { %4413 = vmatprep.subr.bf16.mxu1 %v4908_v54 }
 0x41c   : > { %4398 = vmatmul.mubr.msk.bf16.vlgmr.msra.gmra.mrb[24].mxu0 %vm2170_vm7, %v2162_v1 }
 0x41d   : > { %4404 = vmatmul.mubr.msk.bf16.vlgmr.msra.gmra.mrb[24].mxu1 %vm2170_vm7, %v2163_v2  ;;  %4409 = vmatprep.mubr.msk.bf16.mxu0 %vm4909_vm6, %v4908_v54 }
 0x41e   : > { %4415 = vmatprep.mubr.msk.bf16.mxu1 %vm4909_vm6, %v4908_v54 }
 0x42f   : > { %v1622_v5 = vpop.f32.mrb[12].mxu0 }
 0x430   : > { %v1623_v6 = vadd.f32 %v3763_v3, %v1622_v5  ;;  %v1710_v7 = vpop.f32.mrb[12].mxu1  ;;  %v4293_v9 = vpop.f32.mrb[13].mxu0 }
 0x431   : > { %v1711_v10 = vadd.f32 %v3764_v4, %v1710_v7  ;;  %v1625_v11 = vpop.f32.mrb[14].mxu0  ;;  %v4313_v12 = vpop.f32.mrb[13].mxu1 }
 0x432   : > { %v2168_v13 = vpack.c.bf16 %v1623_v6, %v1623_v6  ;;  %v4294_v14 = vpop.f32.mrb[15].mxu0  ;;  %v1713_v15 = vpop.f32.mrb[14].mxu1 }
 0x433   : > { %v2169_v17 = vpack.c.bf16 %v1711_v10, %v1711_v10  ;;  %v4314_v18 = vpop.f32.mrb[15].mxu1 }
 0x434   : > { %v2267_v20 = vsel %vm2170_vm7, %v2168_v13, 0 }
 0x435   : > { %v2313_v21 = vsel %vm2170_vm7, %v2169_v17, 0  ;;  %4408 = vmatpush3.bf16.xpose.msra.mxu0 %v2267_v20 }
 0x436   : > { %4414 = vmatpush3.bf16.xpose.msra.mxu1 %v2313_v21  ;;  %4419 = vmatprep.subr.bf16.mxu0 %v4908_v54 }
 0x437   : > { %4425 = vmatprep.subr.bf16.mxu1 %v4908_v54 }
 0x43c   : > { %4410 = vmatmul.mubr.msk.bf16.vlgmr.msra.gmra.mrb[28].mxu0 %vm2170_vm7, %v2164_v24 }
 0x43d   : > { %4416 = vmatmul.mubr.msk.bf16.vlgmr.msra.gmra.mrb[28].mxu1 %vm2170_vm7, %v2165_v25  ;;  %4421 = vmatprep.mubr.msk.bf16.mxu0 %vm4909_vm6, %v4908_v54 }
 0x43e   : > { %4427 = vmatprep.mubr.msk.bf16.mxu1 %vm4909_vm6, %v4908_v54 }
 0x44f   : > { %v1892_v28 = vpop.f32.mrb[16].mxu0 }
 0x450   : > { %v1893_v29 = vadd.f32 %v3865_v26, %v1892_v28  ;;  %v4333_v30 = vpop.f32.mrb[17].mxu0  ;;  %v1980_v31 = vpop.f32.mrb[16].mxu1 }
 0x451   : > { %v1895_v32 = vpop.f32.mrb[18].mxu0  ;;  %v1981_v33 = vadd.f32 %v3866_v27, %v1980_v31  ;;  %v4353_v34 = vpop.f32.mrb[17].mxu1 }
 0x452   : > { %v2419_v35 = vpack.c.bf16 %v1893_v29, %v1893_v29  ;;  %v4334_v36 = vpop.f32.mrb[19].mxu0  ;;  %v1983_v37 = vpop.f32.mrb[18].mxu1 }
 0x453   : > { %v2420_v38 = vpack.c.bf16 %v1981_v33, %v1981_v33  ;;  %v4354_v8 = vpop.f32.mrb[19].mxu1 }
 0x454   : > { %v2428_v39 = vsel %vm2426_vm8, %v2419_v35, 0 }
 0x455   : > { %v2474_v40 = vsel %vm2426_vm8, %v2420_v38, 0  ;;  %4420 = vmatpush3.bf16.msra.mxu0 %v2428_v39 }
 0x456   : > { %4426 = vmatpush3.bf16.msra.mxu1 %v2474_v40  ;;  %4431 = vmatprep.subr.bf16.mxu0 %v4908_v54 }
 0x457   : > { %4437 = vmatprep.subr.bf16.mxu1 %v4908_v54 }
 0x46f   : > { %v2068_v43 = vpop.f32.mrb[20].mxu0 }
 0x470   : > { %v2069_v44 = vadd.f32 %v3867_v41, %v2068_v43  ;;  %v2156_v45 = vpop.f32.mrb[20].mxu1  ;;  %v4373_v46 = vpop.f32.mrb[21].mxu0 }
 0x471   : > { %v2157_v47 = vadd.f32 %v3868_v42, %v2156_v45  ;;  %v4393_v48 = vpop.f32.mrb[21].mxu1  ;;  %v2071_v49 = vpop.f32.mrb[22].mxu0 }
 0x472   : > { %v2421_v50 = vpack.c.bf16 %v2069_v44, %v2069_v44  ;;  %v2159_v51 = vpop.f32.mrb[22].mxu1  ;;  %v4374_v52 = vpop.f32.mrb[23].mxu0 }
 0x473   : > { %v2422_v53 = vpack.c.bf16 %v2157_v47, %v2157_v47  ;;  %v4394_v55 = vpop.f32.mrb[23].mxu1 }
 0x474   : > { %v5424_v56 = vsel %vm2426_vm8, %v2421_v50, 0 }
 0x475   : > { %v5427_v57 = vsel %vm2426_vm8, %v2422_v53, 0 }
 0x4ef   : > { %v2211_v58 = vpop.f32.mrb[24].mxu0 }
 0x4f0   : > { %v2355_v60 = vmul.f32 0.17677669, %v2211_v58  ;;  %v2257_v61 = vpop.f32.mrb[24].mxu1  ;;  %v4399_v62 = vpop.f32.mrb[25].mxu0  ;;  %v4691_v58 = vld [vmem:[%s5095_s2] sm:$0xff]  }
 0x4f1   : > { %v2356_v63 = vmul.f32 0.17677669, %v2257_v61  ;;  %v4405_v1 = vpop.f32.mrb[25].mxu1  ;;  %v2214_v2 = vpop.f32.mrb[26].mxu0  ;;  %v4692_v62 = vld [vmem:[%s5095_s2 + $0x8] sm:$0xff]  }
 0x4f2   : > { %v2260_v3 = vpop.f32.mrb[26].mxu1  ;;  %v4400_v4 = vpop.f32.mrb[27].mxu0  ;;  %v2366_v5 = vadd.f32 %v3905_v59, %v2355_v60  ;;  %v4694_v1 = vld [vmem:[%s5095_s2 + $0x18] sm:$0xff]  }
 0x4f3   : > { %v4406_v6 = vpop.f32.mrb[27].mxu1  ;;  %v2367_v9 = vadd.f32 %v3905_v59, %v2356_v63  ;;  %v4693_v63 = vld [vmem:[%s5095_s2 + $0x10] sm:$0xff]   ;;  %v4695_v3 = vld [vmem:[%s5095_s2 + $0x20] sm:$0xff]  }
 0x4f4   : > { %v2371_v7 = vsel %vm2370_vm9, %v2366_v5, -inf }
 0x4f5   : > { %2372 = vmax.xlane.f32.xlu0 %v2371_v7  ;;  %v2374_v10 = vsel %vm2370_vm9, %v2367_v9, -inf }
 0x4f9   : > { %2375 = vmax.xlane.f32.xlu0 %v2374_v10  ;;  %v4696_v10 = vld [vmem:[%s5095_s2 + $0x28] sm:$0xff]  }
 0x50f   : > { %v2303_v11 = vpop.f32.mrb[28].mxu0 }
 0x510   : > { %v2357_v12 = vmul.f32 0.17677669, %v2303_v11  ;;  %v2349_v13 = vpop.f32.mrb[28].mxu1  ;;  %v4411_v14 = vpop.f32.mrb[29].mxu0  ;;  %v4697_v11 = vld [vmem:[%s5095_s2 + $0x30] sm:$0xff]  }
 0x511   : > { %v2358_v15 = vmul.f32 0.17677669, %v2349_v13  ;;  %v4417_v16 = vpop.f32.mrb[29].mxu1  ;;  %v2306_v17 = vpop.f32.mrb[30].mxu0 }
 0x512   : > { %v2352_v18 = vpop.f32.mrb[30].mxu1  ;;  %v4412_v19 = vpop.f32.mrb[31].mxu0  ;;  %v2368_v20 = vadd.f32 %v3905_v59, %v2357_v12  ;;  %v4698_v16 = vld [vmem:[%s5095_s2 + $0x38] sm:$0xff]  }
 0x513   : > { %v4418_v21 = vpop.f32.mrb[31].mxu1  ;;  %v2369_v23 = vadd.f32 %v3905_v59, %v2358_v15 }
 0x514   : > { %v2377_v22 = vsel %vm2370_vm9, %v2368_v20, -inf }
 0x515   : > { %2378 = vmax.xlane.f32.xlu1 %v2377_v22  ;;  %v2380_v24 = vsel %vm2370_vm9, %v2369_v23, -inf }
 0x519   : > { %2381 = vmax.xlane.f32.xlu1 %v2380_v24 }
 0x582   : > { %v2373_v25 = vpop.xlane.xlu0 %2372 }
 0x583   : > { %v2383_v26 = vsub.f32 %v2366_v5, %v2373_v25 }
 0x585   : > { %v2387_v27 = vmul.f32 1.442695, %v2383_v26 }
 0x586   : > { %v2376_v28 = vpop.xlane.xlu0 %2375 }
 0x587   : > { %4739 = vpow2.f32 %v2387_v27  ;;  %v2384_v29 = vsub.f32 %v2367_v9, %v2376_v28 }
 0x589   : > { %v2389_v30 = vmul.f32 1.442695, %v2384_v29 }
 0x58b   : > { %4741 = vpow2.f32 %v2389_v30 }
 0x591   : > { %v4740_v31 = vpop.eup %4739 }
 0x592   : > { %v2395_v32 = vsel %vm2370_vm9, %v4740_v31, 0.0 }
 0x593   : > { %2396 = vadd.xlane.f32.xlu0 %v2395_v32 }
 0x595   : > { %v4742_v33 = vpop.eup %4741 }
 0x596   : > { %v2398_v34 = vsel %vm2370_vm9, %v4742_v33, 0.0 }
 0x597   : > { %2399 = vadd.xlane.f32.xlu1 %v2398_v34 }
 0x5a2   : > { %v2379_v35 = vpop.xlane.xlu1 %2378 }
 0x5a3   : > { %v2385_v36 = vsub.f32 %v2368_v20, %v2379_v35  ;;  %v2852_v35 = vlaneseq }
 0x5a5   : > { %v2391_v37 = vmul.f32 1.442695, %v2385_v36  ;;  %v5480_v36 = vshrl.u32 %v2852_v35, 7  ;;  %v4735_v35 = vld [vmem:[%s5115_s5 + $0x70] sm:$0xff]  }
 0x5a6   : > { %v2382_v38 = vpop.xlane.xlu1 %2381 }
 0x5a7   : > { %4743 = vpow2.f32 %v2391_v37  ;;  %v2386_v8 = vsub.f32 %v2369_v23, %v2382_v38  ;;  %v2854_v37 = vsub.s32 0, %v5480_v36 }
 0x5a9   : > { %v2393_v39 = vmul.f32 1.442695, %v2386_v8  ;;  %v5484_v8 = vld [vmem:[%s5121_s7] sm:$0x3f]  ;;  %s5718_s7 = sld [smem:[#allocation26_spill]] (!%p3954_p1) }
 0x5ab   : > { %4745 = vpow2.f32 %v2393_v39 }
 0x5b1   : > { %v4744_v40 = vpop.eup %4743 }
 0x5b2   : > { %v2401_v41 = vsel %vm2370_vm9, %v4744_v40, 0.0 }
 0x5b3   : > { %2402 = vadd.xlane.f32.xlu0 %v2401_v41 }
 0x5b5   : > { %v4746_v42 = vpop.eup %4745 }
 0x5b6   : > { %v2404_v43 = vsel %vm2370_vm9, %v4746_v42, 0.0 }
 0x5b7   : > { %2405 = vadd.xlane.f32.xlu1 %v2404_v43  ;;  %v2855_v43 = vrot.slane %v5484_v8, %v2854_v37 }
 0x620   : > { %v2397_v44 = vpop.xlane.xlu0 %2396 }
 0x621   : > { %4747 = vrcp.f32 %v2397_v44 }
 0x624   : > { %v2400_v45 = vpop.xlane.xlu1 %2399 }
 0x625   : > { %4749 = vrcp.f32 %v2400_v45 }
 0x62b   : > { %v4748_v46 = vpop.eup %4747 }
 0x62c   : > { %v2408_v47 = vmul.f32 %v4748_v46, %v4740_v31 }
 0x62e   : > { %v2415_v48 = vpack.c.bf16 %v2408_v47, %v2408_v47 }
 0x62f   : > { %v4750_v49 = vpop.eup %4749 }
 0x630   : > { %v2410_v50 = vmul.f32 %v4750_v49, %v4742_v33  ;;  %4422 = vmatmul.mubr.msk.bf16.vlgmr.msra.gmra.mrb[32].mxu0 %vm2370_vm9, %v2415_v48 }
 0x631   : > { %4432 = vmatpush3.bf16.msra.mxu0 %v5424_v56  ;;  %4433 = vmatprep.mubr.msk.bf16.mxu0 %vm4909_vm6, %v4908_v54 }
 0x632   : > { %v2416_v51 = vpack.c.bf16 %v2410_v50, %v2410_v50  ;;  %4443 = vmatprep.subr.bf16.mxu0 %v4908_v54  ;;  %v4763_v50 = vld [vmem:[#allocation2] sm:$0xff] }
 0x634   : > { %4428 = vmatmul.mubr.msk.bf16.vlgmr.msra.gmra.mrb[32].mxu1 %vm2370_vm9, %v2416_v51 }
 0x635   : > { %4438 = vmatpush3.bf16.msra.mxu1 %v5427_v57  ;;  %4439 = vmatprep.mubr.msk.bf16.mxu1 %vm4909_vm6, %v4908_v54 }
 0x636   : > { %4451 = vmatprep.subr.bf16.mxu1 %v4908_v54 }
 0x640   : > { %v2403_v52 = vpop.xlane.xlu0 %2402 }
 0x641   : > { %4751 = vrcp.f32 %v2403_v52  ;;  %v4699_v52 = vld [vmem:[%s5105_s0] ss:$8 sps:$4 sm:$0xff]  }
 0x644   : > { %v2406_v53 = vpop.xlane.xlu1 %2405 }
 0x645   : > { %4753 = vrcp.f32 %v2406_v53  ;;  %v4701_v53 = vld [vmem:[%s5105_s0 + $0x4] ss:$8 sps:$4 sm:$0xff]  }
 0x64b   : > { %v4752_v55 = vpop.eup %4751 }
 0x64c   : > { %v2412_v56 = vmul.f32 %v4752_v55, %v4744_v40  ;;  %v4704_v55 = vld [vmem:[%s5105_s0 + $0x14] ss:$8 sps:$4 sm:$0xff]  }
 0x64e   : > { %v2417_v59 = vpack.c.bf16 %v2412_v56, %v2412_v56  ;;  %v4702_v56 = vld [vmem:[%s5105_s0 + $0x10] ss:$8 sps:$4 sm:$0xff]  }
 0x64f   : > { %v4754_v60 = vpop.eup %4753 }
 0x650   : > { %v2414_v61 = vmul.f32 %v4754_v60, %v4746_v42  ;;  %4434 = vmatmul.mubr.msk.bf16.vlgmr.msra.gmra.mrb[36].mxu0 %vm2370_vm9, %v2417_v59  ;;  %v4705_v59 = vld [vmem:[%s5105_s0 + $0x20] ss:$8 sps:$4 sm:$0xff]  }
 0x651   : > { %4444 = vmatpush3.bf16.msra.mxu0 %v4691_v58  ;;  %4447 = vmatprep.mubr.msk.bf16.mxu0 %vm4909_vm6, %v4908_v54  ;;  %v4707_v58 = vld [vmem:[%s5105_s0 + $0x24] ss:$8 sps:$4 sm:$0xff]  }
 0x652   : > { %v2418_v57 = vpack.c.bf16 %v2414_v61, %v2414_v61  ;;  %4445 = vmatprep.subr.bf16.mxu0 %v4908_v54 }
 0x654   : > { %4440 = vmatmul.mubr.msk.bf16.vlgmr.msra.gmra.mrb[36].mxu1 %vm2370_vm9, %v2418_v57 }
 0x655   : > { %4455 = vmatprep.mubr.msk.bf16.mxu1 %vm4909_vm6, %v4908_v54  ;;  %4446 = vmatpush3.bf16.msra.mxu0 %v4692_v62 }
 0x656   : > { %4452 = vmatpush3.bf16.msra.mxu1 %v4693_v63  ;;  %4459 = vmatprep.subr.bf16.mxu0 %v4908_v54  ;;  %v4710_v63 = vld [vmem:[%s5105_s0 + $0x34] ss:$8 sps:$4 sm:$0xff]  }
 0x657   : > { %4453 = vmatprep.subr.bf16.mxu1 %v4908_v54 }
 0x65a   : > { %4454 = vmatpush3.bf16.msra.mxu1 %v4694_v1  ;;  %v4708_v1 = vld [vmem:[%s5105_s0 + $0x30] ss:$8 sps:$4 sm:$0xff]  }
 0x65b   : > { %4467 = vmatprep.subr.bf16.mxu1 %v4908_v54 }
 0x703   : > { %v2464_v2 = vpop.f32.mrb[32].mxu0 }
 0x704   : > { %v2609_v4 = vpack.c.bf16 %v2464_v2, %v2464_v2  ;;  %v4423_v5 = vpop.f32.mrb[33].mxu0  ;;  %v4713_v2 = vld [vmem:[%s5105_s0 + $0x44] ss:$8 sps:$4 sm:$0xff]  }
 0x705   : > { %v2467_v6 = vpop.f32.mrb[34].mxu0  ;;  %v4714_v5 = vld [vmem:[%s5105_s0 + $0x50] ss:$8 sps:$4 sm:$0xff]  }
 0x706   : > { %v4424_v7 = vpop.f32.mrb[35].mxu0  ;;  %4448 = vmatmul.mubr.msk.bf16.vlgmr.msra.gmra.mrb[40].mxu0 %vm2170_vm7, %v2609_v4  ;;  %v4716_v4 = vld [vmem:[%s5105_s0 + $0x54] ss:$8 sps:$4 sm:$0xff]   ;;  %v4719_v6 = vld [vmem:[%s5105_s0 + $0x64] ss:$8 sps:$4 sm:$0xff]  }
 0x707   : > { %v2510_v9 = vpop.f32.mrb[32].mxu1  ;;  %4460 = vmatpush3.bf16.msra.mxu0 %v4695_v3  ;;  %4463 = vmatprep.mubr.msk.bf16.mxu0 %vm4909_vm6, %v4908_v54  ;;  %v4711_v3 = vld [vmem:[%s5105_s0 + $0x40] ss:$8 sps:$4 sm:$0xff]  }
 0x708   : > { %v2610_v12 = vpack.c.bf16 %v2510_v9, %v2510_v9  ;;  %v4429_v13 = vpop.f32.mrb[33].mxu1  ;;  %4461 = vmatprep.subr.bf16.mxu0 %v4908_v54  ;;  %v4717_v7 = vld [vmem:[%s5105_s0 + $0x60] ss:$8 sps:$4 sm:$0xff]   ;;  %v4722_v9 = vld [vmem:[%s5105_s0 + $0x74] ss:$8 sps:$4 sm:$0xff]  }
 0x709   : > { %v2513_v14 = vpop.f32.mrb[34].mxu1 }
 0x70a   : > { %v4430_v15 = vpop.f32.mrb[35].mxu1  ;;  %4456 = vmatmul.mubr.msk.bf16.vlgmr.msra.gmra.mrb[40].mxu1 %vm2170_vm7, %v2610_v12 }
 0x70b   : > { %4462 = vmatpush3.bf16.msra.mxu0 %v4696_v10  ;;  %4468 = vmatpush3.bf16.msra.mxu1 %v4697_v11  ;;  %v4720_v10 = vld [vmem:[%s5105_s0 + $0x70] ss:$8 sps:$4 sm:$0xff]   ;;  %v4910_v11 = vmov 0   ;;  %v2872_v15 = vsub.s32 1, %v5480_v36 }
 0x70c   : > { %4469 = vmatprep.subr.bf16.mxu1 %v4908_v54  ;;  %4471 = vmatprep.mubr.msk.bf16.mxu1 %vm4909_vm6, %v4908_v54 }
 0x70d   : > { %2989 = vmatprep.subr.bf16.mxu0 %v4701_v53 }
 0x70f   : > { %4470 = vmatpush3.bf16.msra.mxu1 %v4698_v16  ;;  %v2877_v16 = vsub.s32 2, %v5480_v36 }
 0x723   : > { %v2556_v17 = vpop.f32.mrb[36].mxu0 }
 0x724   : > { %v2611_v18 = vpack.c.bf16 %v2556_v17, %v2556_v17  ;;  %v4435_v19 = vpop.f32.mrb[37].mxu0  ;;  %v2873_v17 = vrot.slane %v5484_v8, %v2872_v15 }
 0x725   : > { %v2559_v20 = vpop.f32.mrb[38].mxu0 }
 0x726   : > { %v4436_v21 = vpop.f32.mrb[39].mxu0  ;;  %4464 = vmatmul.mubr.msk.bf16.vlgmr.msra.gmra.mrb[44].mxu0 %vm2170_vm7, %v2611_v18  ;;  %v2878_v20 = vrot.slane %v5484_v8, %v2877_v16 }
 0x727   : > { %v2602_v22 = vpop.f32.mrb[36].mxu1  ;;  %2990 = vmatpush1.bf16.msra.mxu0 %v4699_v52  ;;  %3021 = vmatprep.mubr.bf16.mxu0 %v4910_v11 }
 0x728   : > { %v2612_v23 = vpack.c.bf16 %v2602_v22, %v2602_v22  ;;  %v4441_v24 = vpop.f32.mrb[37].mxu1  ;;  %2991 = vmatprep.subr.bf16.mxu0 %v4704_v55 }
 0x729   : > { %v2605_v25 = vpop.f32.mrb[38].mxu1  ;;  %v4723_v24 = vld [vmem:[%s5115_s5 + $0x40] sm:$0xff]  }
 0x72a   : > { %v4442_v26 = vpop.f32.mrb[39].mxu1  ;;  %4472 = vmatmul.mubr.msk.bf16.vlgmr.msra.gmra.mrb[44].mxu1 %vm2170_vm7, %v2612_v23  ;;  %v4724_v25 = vld [vmem:[%s5115_s5] sm:$0xff]   ;;  %4112 = vmatprep.subr.bf16.mxu1 %v4723_v24 }
 0x72b   : > { %2992 = vmatpush1.bf16.msra.mxu0 %v4702_v56  ;;  %4113 = vmatpush3.bf16.msra.mxu1 %v4724_v25  ;;  %v4725_v26 = vld [vmem:[%s5115_s5 + $0x48] sm:$0xff]   ;;  %v3236_v25 = vsub.s32 4, %v5480_v36 }
 0x72c   : > { %2993 = vmatprep.subr.bf16.mxu0 %v4707_v58  ;;  %4114 = vmatprep.subr.bf16.mxu1 %v4725_v26  ;;  %v3241_v26 = vsub.s32 5, %v5480_v36 }
 0x72f   : > { %2994 = vmatpush1.bf16.msra.mxu0 %v4705_v59 }
 0x730   : > { %2995 = vmatprep.subr.bf16.mxu0 %v4710_v63 }
 0x733   : > { %2996 = vmatpush1.bf16.msra.mxu0 %v4708_v1 }
 0x734   : > { %2997 = vmatprep.subr.bf16.mxu0 %v4713_v2 }
 0x737   : > { %2998 = vmatpush1.bf16.msra.mxu0 %v4711_v3 }
 0x738   : > { %2999 = vmatprep.subr.bf16.mxu0 %v4716_v4 }
 0x73b   : > { %3000 = vmatpush1.bf16.msra.mxu0 %v4714_v5 }
 0x73c   : > { %3001 = vmatprep.subr.bf16.mxu0 %v4719_v6 }
 0x73f   : > { %3002 = vmatpush1.bf16.msra.mxu0 %v4717_v7  ;;  %v3084_v7 = vsub.s32 3, %v5480_v36  ;;  %v4765_v36 = vld [vmem:[%s5718_s7 + $0x8] sm:$0xff] (!%p3954_p1)  }
 0x740   : > { %3003 = vmatprep.subr.bf16.mxu0 %v4722_v9 }
 0x743   : > { %3004 = vmatpush1.bf16.msra.mxu0 %v4720_v10  ;;  %v3085_v10 = vrot.slane %v5484_v8, %v3084_v7 }
 0x7d9   : > { %v2678_v27 = vpop.f32.mrb[40].mxu0 }
 0x7da   : > { %v4449_v28 = vpop.f32.mrb[41].mxu0 }
 0x7db   : > { %v2681_v29 = vpop.f32.mrb[42].mxu0  ;;  %v4727_v28 = vld [vmem:[%s5115_s5 + $0x50] sm:$0xff]  }
 0x7dc   : > { %v4450_v54 = vpop.f32.mrb[43].mxu0  ;;  %v4728_v29 = vld [vmem:[%s5115_s5 + $0x10] sm:$0xff]  }
 0x7dd   : > { %v2733_v30 = vpop.f32.mrb[40].mxu1  ;;  %v4729_v54 = vld [vmem:[%s5115_s5 + $0x58] sm:$0xff]  }
 0x7de   : > { %v2849_v31 = vadd.f32 %v2733_v30, %v2678_v27  ;;  %v4457_v32 = vpop.f32.mrb[41].mxu1  ;;  %v4726_v27 = vld [vmem:[%s5115_s5 + $0x8] sm:$0xff]   ;;  %v4730_v30 = vld [vmem:[%s5115_s5 + $0x18] sm:$0xff]  }
 0x7df   : > { %v2736_v33 = vpop.f32.mrb[42].mxu1  ;;  %4115 = vmatpush3.bf16.msra.mxu1 %v4726_v27  ;;  %v4732_v32 = vld [vmem:[%s5115_s5 + $0x20] sm:$0xff]   ;;  %v3237_v27 = vrot.slane %v5484_v8, %v3236_v25 }
 0x7e0   : > { %v4458_v34 = vpop.f32.mrb[43].mxu1  ;;  %4116 = vmatprep.subr.bf16.mxu1 %v4727_v28  ;;  %v4733_v33 = vld [vmem:[%s5115_s5 + $0x68] sm:$0xff]  }
 0x7e1   : > { %v4734_v34 = vld [vmem:[%s5115_s5 + $0x28] sm:$0xff]  }
 0x7e3   : > { %4117 = vmatpush3.bf16.msra.mxu1 %v4728_v29 }
 0x7e4   : > { %4118 = vmatprep.subr.bf16.mxu1 %v4729_v54 }
 0x7e7   : > { %4119 = vmatpush3.bf16.msra.mxu1 %v4730_v30 }
 0x7f9   : > { %v2788_v38 = vpop.f32.mrb[44].mxu0 }
 0x7fa   : > { %v2850_v39 = vadd.f32 %v2849_v31, %v2788_v38  ;;  %v4465_v40 = vpop.f32.mrb[45].mxu0  ;;  %v4731_v31 = vld [vmem:[%s5115_s5 + $0x60] sm:$0xff]   ;;  %v4736_v38 = vld [vmem:[%s5115_s5 + $0x30] sm:$0xff]  }
 0x7fb   : > { %v2791_v41 = vpop.f32.mrb[46].mxu0  ;;  %4120 = vmatprep.subr.bf16.mxu1 %v4731_v31  ;;  %v4738_v40 = vld [vmem:[%s5115_s5 + $0x38] sm:$0xff]   ;;  %v4764_v31 = vld [vmem:[%s5718_s7] sm:$0xff] (!%p3954_p1)  }
 0x7fc   : > { %v4466_v42 = vpop.f32.mrb[47].mxu0  ;;  %4121 = vmatpush3.bf16.msra.mxu1 %v4732_v32  ;;  %v2897_v41 = vld [vmem:[%s5110_s18] sm:$0x3]  ;;  %v4911_v32 = vmov (!%p3954_p1), 0.0  }
 0x7fd   : > { %v2843_v44 = vpop.f32.mrb[44].mxu1  ;;  %4122 = vmatprep.subr.bf16.mxu1 %v4733_v33  ;;  %v2902_v42 = vrot.slane %v2897_v41, %v2854_v37  ;;  %4475 = vmatprep.subr.bf16.mxu0 (!%p3954_p1), %v4911_v32  ;;  %v4767_v33 = vld [vmem:[%s5718_s7 + $0x18] sm:$0xff] (!%p3954_p1)  }
 0x7fe   : > { %v2851_v45 = vadd.f32 %v2850_v39, %v2843_v44  ;;  %v4473_v46 = vpop.f32.mrb[45].mxu1  ;;  %v4737_v39 = vld [vmem:[%s5115_s5 + $0x78] sm:$0xff]  }
 0x7ff   : > { %v2846_v47 = vpop.f32.mrb[46].mxu1 }
 0x800   : > { %v2856_v48 = vadd.f32 %v2855_v43, %v2851_v45  ;;  %v4474_v49 = vpop.f32.mrb[47].mxu1  ;;  %4123 = vmatpush3.bf16.msra.mxu1 %v4734_v34  ;;  %v2906_v43 = vrot.slane %v2897_v41, %v2872_v15  ;;  %v4768_v34 = vld [vmem:[%s5718_s7 + $0x20] sm:$0xff] (!%p3954_p1)   ;;  %v3316_v41 = vrot.slane (!%p3954_p1), %v5071_v0, 3 }
 0x801   : > { %4124 = vmatprep.subr.bf16.mxu1 %v4735_v35  ;;  %v4769_v35 = vld [vmem:[%s5718_s7 + $0x28] sm:$0xff] (!%p3954_p1)  }
 0x802   : > { %v2857_v51 = vadd.f32 %v4763_v50, %v2856_v48 }
 0x804   : > { %2858 = vadd.xlane.f32.xlu0 %v2857_v51  ;;  %4125 = vmatpush3.bf16.msra.mxu1 %v4736_v38  ;;  %v4770_v38 = vld [vmem:[%s5718_s7 + $0x30] sm:$0xff] (!%p3954_p1)  }
 0x805   : > { %4126 = vmatprep.subr.bf16.mxu1 %v4737_v39  ;;  %v4771_v39 = vld [vmem:[%s5718_s7 + $0x38] sm:$0xff] (!%p3954_p1)  }
 0x808   : > { %4127 = vmatpush3.bf16.msra.mxu1 %v4738_v40 }
 0x891   : > { %v2859_v60 = vpop.xlane.xlu0 %2858 }
 0x892   : > { %v2861_v61 = vmul.f32 0.0078125, %v2859_v60 }
 0x894   : > { %v2862_v57 = vsub.f32 %v2857_v51, %v2861_v61 }
 0x896   : > { %v2863_v62 = vmul.f32 %v2862_v57, %v2862_v57 }
 0x898   : > { %2864 = vadd.xlane.f32.xlu1 %v2863_v62 }
 0x925   : > { %v2865_v12 = vpop.xlane.xlu1 %2864 }
 0x926   : > { %v2866_v13 = vmul.f32 0.0078125, %v2865_v12 }
 0x928   : > { %v2867_v14 = vadd.f32 1e-12, %v2866_v13 }
 0x92a   : > { %4755 = vrsqrt.f32 %v2867_v14 }
 0x934   : > { %v4756_v18 = vpop.eup %4755 }
 0x935   : > { %v2869_v19 = vmul.f32 %v4756_v18, %v2862_v57 }
 0x937   : > { %v2874_v21 = vmul.f32 %v2873_v17, %v2869_v19 }
 0x939   : > { %v5509_v22 = vadd.f32 %v2878_v20, %v2874_v21 }
 0x93b   : > { %v2880_v23 = vpack.c.bf16 %v5509_v22, %v5509_v22 }
 0x93d   : > { %3022 = vmatmul.mubr.bf16.vlgmr.msra.gmra.mrb[48].mxu0 %v2880_v23 }
 0x93e   : > { %4476 = vmatpush3.bf16.msra.mxu0 (!%p3954_p1), %v4764_v31  ;;  %4491 = vmatprep.mubr.msk.bf16.mxu0 (!%p3954_p1), %vm4912_vm10, %v4911_v32 }
 0x93f   : > { %4477 = vmatprep.subr.bf16.mxu0 (!%p3954_p1), %v4911_v32 }
 0x942   : > { %4478 = vmatpush3.bf16.msra.mxu0 (!%p3954_p1), %v4765_v36 }
 0x943   : > { %4479 = vmatprep.subr.bf16.mxu0 (!%p3954_p1), %v4911_v32 }
 0xa10   : > { %v3023_v44 = vpop.f32.mrb[48].mxu0 }
 0xa11   : > { %v3024_v45 = vadd.f32 %v3023_v44, %v2902_v42  ;;  %v3025_v46 = vpop.f32.mrb[49].mxu0 }
 0xa12   : > { %v3026_v47 = vadd.f32 %v3025_v46, %v2906_v43  ;;  %v3027_v48 = vpop.f32.mrb[50].mxu0 }
 0xa13   : > { %v3030_v49 = vmul.f32 %v3024_v45, %v3024_v45  ;;  %v3028_v50 = vpop.f32.mrb[51].mxu0 }
 0xa14   : > { %v3031_v51 = vmul.f32 %v3026_v47, %v3026_v47 }
 0xa15   : > { %v3032_v52 = vmul.f32 %v3030_v49, %v3024_v45 }
 0xa16   : > { %v3033_v53 = vmul.f32 %v3031_v51, %v3026_v47 }
 0xa17   : > { %v3034_v55 = vmul.f32 0.044715, %v3032_v52 }
 0xa18   : > { %v3035_v56 = vmul.f32 0.044715, %v3033_v53 }
 0xa19   : > { %v3036_v58 = vadd.f32 %v3034_v55, %v3024_v45 }
 0xa1a   : > { %v3037_v59 = vadd.f32 %v3035_v56, %v3026_v47 }
 0xa1b   : > { %v3038_v60 = vmul.f32 0.7978846, %v3036_v58 }
 0xa1c   : > { %v3039_v61 = vmul.f32 0.7978846, %v3037_v59 }
 0xa1d   : > { %4757 = vtanh.f32 %v3038_v60 }
 0xa1e   : > { %4759 = vtanh.f32 %v3039_v61 }
 0xa27   : > { %v4758_v37 = vpop.eup %4757 }
 0xa28   : > { %v4760_v57 = vpop.eup %4759  ;;  %v3042_v62 = vadd.f32 1.0, %v4758_v37 }
 0xa29   : > { %v3043_v63 = vadd.f32 1.0, %v4760_v57 }
 0xa2a   : > { %v3044_v1 = vmul.f32 0.5, %v3042_v62 }
 0xa2b   : > { %v3045_v2 = vmul.f32 0.5, %v3043_v63 }
 0xa2c   : > { %v3046_v3 = vmul.f32 %v3044_v1, %v3024_v45 }
 0xa2d   : > { %v3047_v4 = vmul.f32 %v3045_v2, %v3026_v47 }
 0xa2e   : > { %v3048_v6 = vpack.c.bf16 %v3046_v3, %v3046_v3 }
 0xa2f   : > { %v3049_v5 = vpack.c.bf16 %v3047_v4, %v3047_v4 }
 0xa31   : > { %3214 = vmatprep.mubr.bf16.mxu1 %v3049_v5 }
 0xa32   : > { %3215 = vmatmul.mubr.bf16.vlgmr.msra.gmra.mrb[48].mxu1 %v3048_v6 }
 0xb05   : > { %v4128_v9 = vpop.f32.mrb[48].mxu1 }
 0xb06   : > { %v4129_v11 = vpop.f32.mrb[49].mxu1 }
 0xb07   : > { %v4130_v12 = vadd.f32 %v4129_v11, %v4128_v9  ;;  %v4131_v13 = vpop.f32.mrb[50].mxu1 }
 0xb08   : > { %v4132_v14 = vpop.f32.mrb[51].mxu1 }
 0xb09   : > { %v3217_v15 = vadd.f32 %v4130_v12, %v3085_v10 }
 0xb0b   : > { %v3222_v16 = vadd.f32 %v3217_v15, %v5509_v22  ;;  %v3242_v22 = vrot.slane %v5484_v8, %v3241_v26  ;;  %v4766_v8 = vld [vmem:[%s5718_s7 + $0x10] sm:$0xff] (!%p3954_p1)  }
 0xb0c   : > { %4480 = vmatpush3.bf16.msra.mxu0 (!%p3954_p1), %v4766_v8 }
 0xb0d   : > { %3223 = vadd.xlane.f32.xlu0 %v3222_v16  ;;  %4481 = vmatprep.subr.bf16.mxu0 (!%p3954_p1), %v4911_v32 }
 0xb10   : > { %4482 = vmatpush3.bf16.msra.mxu0 (!%p3954_p1), %v4767_v33 }
 0xb11   : > { %4483 = vmatprep.subr.bf16.mxu0 (!%p3954_p1), %v4911_v32 }
 0xb14   : > { %4484 = vmatpush3.bf16.msra.mxu0 (!%p3954_p1), %v4768_v34 }
 0xb15   : > { %4485 = vmatprep.subr.bf16.mxu0 (!%p3954_p1), %v4911_v32 }
 0xb18   : > { %4486 = vmatpush3.bf16.msra.mxu0 (!%p3954_p1), %v4769_v35 }
 0xb19   : > { %4487 = vmatprep.subr.bf16.mxu0 (!%p3954_p1), %v4911_v32 }
 0xb1c   : > { %4488 = vmatpush3.bf16.msra.mxu0 (!%p3954_p1), %v4770_v38 }
 0xb1d   : > { %4489 = vmatprep.subr.bf16.mxu0 (!%p3954_p1), %v4911_v32 }
 0xb20   : > { %4490 = vmatpush3.bf16.msra.mxu0 (!%p3954_p1), %v4771_v39 }
 0xb9a   : > { %v3224_v17 = vpop.xlane.xlu0 %3223 }
 0xb9b   : > { %v3225_v18 = vmul.f32 0.0078125, %v3224_v17 }
 0xb9d   : > { %v3226_v19 = vsub.f32 %v3222_v16, %v3225_v18 }
 0xb9f   : > { %v3227_v20 = vmul.f32 %v3226_v19, %v3226_v19 }
 0xba1   : > { %3228 = vadd.xlane.f32.xlu1 %v3227_v20 }
 0xc2e   : > { %v3229_v21 = vpop.xlane.xlu1 %3228 }
 0xc2f   : > { %v3230_v23 = vmul.f32 0.0078125, %v3229_v21 }
 0xc31   : > { %v3231_v24 = vadd.f32 1e-12, %v3230_v23 }
 0xc33   : > { %4761 = vrsqrt.f32 %v3231_v24 }
 0xc3d   : > { %v4762_v28 = vpop.eup %4761 }
 0xc3e   : > { %v3233_v29 = vmul.f32 %v4762_v28, %v3226_v19  ;;  %3249 = sbr.rel (%p3954_p1) target bundleno = 3368 (0xd28), region = 80 }
 0xc40   : > { %v3238_v54 = vmul.f32 %v3237_v27, %v3233_v29 }
 0xc42   : > { %v3243_v30 = vadd.f32 %v3242_v22, %v3238_v54 }
 0xc44   : > { %3244 = vst [vmem:[#allocation2] sm:$0xff] %v3243_v30  ;;  %3245 = vst [vmem:[%s5126_s9] sm:$0xff] %v3243_v30  ;;  %v3250_v40 = vpack.c.bf16 (!%p3954_p1), %v3243_v30, %v3243_v30 }
 0xc46   : > { %4492 = vmatmul.mubr.bf16.vlgmr.msra.gmra.mrb[0].mxu0 %v3250_v40 }
 0xd19   : > { %v3352_v42 = vpop.f32.mrb[0].mxu0 }
 0xd1a   : > { %v3353_v43 = vadd.f32 %v3352_v42, %v3316_v41  ;;  %v4493_v44 = vpop.f32.mrb[1].mxu0 }
 0xd1b   : > { %v3355_v45 = vpop.f32.mrb[2].mxu0 }
 0xd1c   : > { %4772 = vtanh.f32 %v3353_v43  ;;  %v4494_v46 = vpop.f32.mrb[3].mxu0 }
 0xd26   : > { %v4773_v47 = vpop.eup %4772 }
 0xd27   : > { %3359 = vst [vmem:[%s629_s30] sm:$0x1] %v4773_v47 }
 0xd28 PF: > { %s5719_s28 = sld [smem:[#allocation12_spill]]  ;;  %s5721_s26 = sld [smem:[#allocation31_spill]] }
 0xd29   : > { %s3386_s2 = sshll.u32 %s5128_s13, 4  ;;  %s3361_s17 = scalar_lea.sflag [#allocation4], %s5065_s27  ;;  %s3387_s2 = int_to_ptr.vmem [resolvable:$true] %s3386_s2 }
 0xd2a   : > { %s4774_s18 = scalar_lea.vmem %s3387_s2, 128  ;;  %s4913_s5 = smov [#allocation3]  }
 0xd2b   : > { %p4775_p2 = scmp.ne.s32.totalorder %s3387_s2, %s4774_s18  ;;  %s4778_s9 = sshll.u32 %s4913_s5, 4  ;;  %s4779_s9 = int_to_ptr.vmem [resolvable:$false] %s4778_s9 }
 0xd2c   : > { %s4780_s21 = scalar_lea.vmem %s4779_s9, 256  ;;  %p4781_p6 = scmp.lt.s32.totalorder %s3387_s2, %s4779_s9 }
 0xd2d   : > { %p4776_p4 = pnand %p4775_p2, %p5044_p3  ;;  %p4782_p7 = scmp.lt.s32.totalorder %s4780_s21, %s4774_s18 }
 0xd2e   : > { %s3964_s19 = sshll.u32 %s5719_s28, 7 }
 0xd2f   : > { %s5572_s0 = scalar_lea.hbm %s5721_s26, %s3964_s19  ;;  %p4777_p5 = pneg %p4776_p4 }
 0xd30   : > { %p4783_p8 = por %p4782_p7, %p4781_p6 }
 0xd32   : > { %p4784_p10 = pnand %p4783_p8, %p4777_p5 }
 0xd34   : > { %4787 = shalt.err (!%p4784_p10)
}
 0xd35   : > { %s4788_s13 = scalar_lea.hbm %s5572_s0, 128  ;;  %s4792_s6 = scalar_lea.hbm %s5721_s26, 256 }
 0xd36   : > { %p4789_p11 = scmp.ne.s32.totalorder %s5572_s0, %s4788_s13  ;;  %p4793_p0 = scmp.lt.u32.totalorder %s5572_s0, %s5721_s26 }
 0xd37   : > { %p4794_p1 = scmp.lt.u32.totalorder %s4792_s6, %s4788_s13  ;;  %p4796_p4 = scmp.lt.u32.totalorder %s4788_s13, %s5572_s0 }
 0xd38   : > { %p4790_p12 = pnand %p4789_p11, %p5044_p3 }
 0xd39   : > { %p4795_p2 = por %p4794_p1, %p4793_p0 }
 0xd3a   : > { %p4791_p13 = pneg %p4790_p12 }
 0xd3b   : > { %p4797_p5 = por %p4796_p4, %p4795_p2 }
 0xd3d   : > { %p4798_p6 = pnand %p4797_p5, %p4791_p13 }
 0xd3f   : > { %4801 = shalt.err (!%p4798_p6)
}
 0xd40   : > { %4497 = dma.vmem_to_hbm [thread:$0]  (%p5044_p3), %s3387_s2, 128, %s5572_s0, %s3361_s17  }
 0xd41   : > { %s3965_s29 = sshll.u32 %s5719_s28, 4  ;;  %s3402_s3 = sshll.u32 %s629_s30, 4  ;;  %s3403_s3 = int_to_ptr.vmem [resolvable:$true] %s3402_s3 }
 0xd42   : > { %s5722_s19 = sld [smem:[#allocation32_spill]]  ;;  %s3374_s18 = scalar_lea.sflag [#allocation6], %s5065_s27 }
 0xd43   : > { %s4802_s5 = scalar_lea.vmem %s3403_s3, 16  ;;  %s4914_s9 = smov [#allocation5]  }
 0xd44   : > { %p4803_p7 = scmp.ne.s32.totalorder %s3403_s3, %s4802_s5  ;;  %s4806_s21 = sshll.u32 %s4914_s9, 4  ;;  %s4807_s21 = int_to_ptr.vmem [resolvable:$false] %s4806_s21 }
 0xd45   : > { %s4808_s13 = scalar_lea.vmem %s4807_s21, 32  ;;  %p4809_p11 = scmp.lt.s32.totalorder %s3403_s3, %s4807_s21 }
 0xd46   : > { %p4804_p8 = pnand %p4803_p7, %p5044_p3  ;;  %p4810_p12 = scmp.lt.s32.totalorder %s4808_s13, %s4802_s5 }
 0xd48   : > { %s5723_s16 = smov %s5722_s19  ;;  %s5599_s22 = scalar_lea.hbm %s5722_s19, %s3965_s29 }
 0xd49   : > { %p4805_p10 = pneg %p4804_p8  ;;  %p4811_p13 = por %p4810_p12, %p4809_p11 }
 0xd4b   : > { %p4812_p0 = pnand %p4811_p13, %p4805_p10 }
 0xd4d   : > { %4815 = shalt.err (!%p4812_p0)
}
 0xd4e   : > { %s4816_s27 = scalar_lea.hbm %s5599_s22, 16  ;;  %s4820_s0 = scalar_lea.hbm %s5723_s16, 32 }
 0xd4f   : > { %p4817_p1 = scmp.ne.s32.totalorder %s5599_s22, %s4816_s27  ;;  %p4821_p5 = scmp.lt.u32.totalorder %s5599_s22, %s5723_s16 }
 0xd50   : > { %p4822_p6 = scmp.lt.u32.totalorder %s4820_s0, %s4816_s27  ;;  %p4824_p8 = scmp.lt.u32.totalorder %s4816_s27, %s5599_s22 }
 0xd51   : > { %p4818_p2 = pnand %p4817_p1, %p5044_p3 }
 0xd52   : > { %p4823_p7 = por %p4822_p6, %p4821_p5 }
 0xd53   : > { %p4819_p4 = pneg %p4818_p2 }
 0xd54   : > { %p4825_p10 = por %p4824_p8, %p4823_p7 }
 0xd56   : > { %p4826_p11 = pnand %p4825_p10, %p4819_p4 }
 0xd58   : > { %4829 = shalt.err (!%p4826_p11)
}
 0xd59   : > { %4498 = dma.vmem_to_hbm [thread:$0]  (%p5044_p3), %s3403_s3, 16, %s5599_s22, %s3374_s18  }
 0xd5a PF: > { %s5724_s1 = sld [smem:[#allocation15_spill]]  ;;  %s5725_s24 = sld [smem:[#allocation9_spill]] }
 0xd60   : > { %p4508_p12 = scmp.ge.s32.totalorder %s5724_s1, 2  ;;  %s3414_s8 = sand.u32 1, %s5725_s24  }
 0xd61   : > { %s3415_s15 = scalar_lea.sflag [#allocation4], %s3414_s8 }
 0xd62   : > { %p4502_p13 = pnand %p4508_p12, %p5054_p9 }
 0xd64   : > { %4863 = dma.done.wait (!%p4502_p13), %s3415_s15, 128  }
 0xd65   : > { %4865 = vsyncadd (!%p4502_p13), %s3415_s15, 4294967168  ;;  %s3435_s29 = scalar_lea.sflag [#allocation6], %s3414_s8 }
 0xd66   : > { %4867 = dma.done.wait (!%p4502_p13), %s3435_s29, 16  }
 0xd67   : > { %4869 = vsyncadd (!%p4502_p13), %s3435_s29, 4294967280  ;;  %s32_s25 = sadd.s32 1, %s5724_s1   ;;  %s5727_s18 = sld [smem:[#allocation10_spill]] }
 0xd68   : > { %p29_p0 = scmp.ge.s32.totalorder %s32_s25, 6   ;;  %s5728_s19 = sld [smem:[#allocation11_spill]] }
 0xd69   : > { %s5729_s20 = sld [smem:[#allocation20_spill]]  ;;  %s5730_s21 = sld [smem:[#allocation13_spill]] }
 0xd6a   : > { %s5731_s22 = sld [smem:[#allocation14_spill]]  ;;  %s5732_s23 = sld [smem:[#allocation16_spill]] }
 0xd6b   : > { %s5733_s24 = sld [smem:[#allocation18_spill]]  ;;  %31 = sbr.rel (!%p29_p0) target bundleno = 20 (0x14), region = 172 }
 0xd72   :  { %3439 = vsyncpa [#allocation4], 1 }
 0xd73   :  { %3441 = vsyncpa [#allocation4 + $0x1], 1 }
 0xd74   :  { %3442 = vsyncpa [#allocation6], 1 }
 0xd75   :  { %3444 = vsyncpa [#allocation6 + $0x1], 1 }

</bundles_post_ra>
